<compile_context>
chip_gen: v6e
topology: v6e:2x2x1
jax: 0.10.0
libtpu: 0.0.40
codegen_flags: <defaults>
</compile_context>

<pallas_src>
import jax
import jax.numpy as jnp
from jax.experimental import pallas as pl
from jax.experimental.pallas import tpu as pltpu


# ---------------------------------------------------------------------------
# Helpers
# ---------------------------------------------------------------------------

def _pixel_group(num_pixels, cout):
    """Pixels grouped per chunk so the chunk width G*Cout fills the 128 lanes."""
    g = max(1, 128 // max(1, cout))
    while g > 1 and num_pixels % g != 0:
        g //= 2
    return g


# ---------------------------------------------------------------------------
# Fused Pallas kernel: conv1x1(+b,ReLU) -> fc1 -> ReLU -> fc2 -> ReLU -> fc5 -> ReLU
# ---------------------------------------------------------------------------

def _make_fused_kernel(PG):
    def kernel(sa_ref, wbd_ref, cb_ref, w1_ref, b1_ref, w2_ref, b2_ref,
               w5_ref, b5_ref, o_ref):
        # sa_ref : (PG, TB, G*Cin) f32   inputs, pixel-group major, batch rows contiguous
        # wbd_ref: (G*Cin, G*Cout) bf16  block-diagonal 1x1-conv weight
        # cb_ref : (1, G*Cout)     f32   conv bias tiled G times
        # w1_ref : (PG, G*Cout, E) bf16  fc1 weight split into pixel-major K chunks
        # b1/b2/b5 f32 biases; w2 (E,2E), w5 (2E,E) bf16
        # o_ref  : (TB, E)         f32
        wbd = wbd_ref[...]
        cb = cb_ref[...]
        acc = jnp.zeros(o_ref.shape, jnp.float32)          # fc1 accumulator (f32)
        # Chunked pixel contraction: each chunk = 1x1 conv for G pixels (one
        # lane-dense (TB,128) tile that never leaves VMEM) immediately folded
        # into fc1's K dimension.
        for pg in range(PG):
            x = sa_ref[pg].astype(jnp.bfloat16)             # (TB, G*Cin), cast in-kernel
            h = jnp.dot(x, wbd, preferred_element_type=jnp.float32) + cb
            h = jnp.maximum(h, 0.0).astype(jnp.bfloat16)    # conv+ReLU, (TB, 128)
            acc = acc + jnp.dot(h, w1_ref[pg], preferred_element_type=jnp.float32)
        z = jnp.maximum(acc + b1_ref[...], 0.0).astype(jnp.bfloat16)
        z = jnp.dot(z, w2_ref[...], preferred_element_type=jnp.float32) + b2_ref[...]
        z = jnp.maximum(z, 0.0).astype(jnp.bfloat16)
        z = jnp.dot(z, w5_ref[...], preferred_element_type=jnp.float32) + b5_ref[...]
        o_ref[...] = jnp.maximum(z, 0.0)
    return kernel


# ---------------------------------------------------------------------------
# Wrapper
# ---------------------------------------------------------------------------

def state_action_encoder(state_nhwc, action_nchw, params):
    """Pallas implementation of StateActionEncoder.forward.

    state_nhwc : (N, H, W, C)   (PyTorch permutes this to NCHW internally)
    action_nchw: (N, A, H, W)
    returns    : (N, state_action_embed_dim) float32
    """
    N, H, W, C = state_nhwc.shape
    A = action_nchw.shape[1]
    Cin = C + A
    P = H * W
    GCin, KC = params["w_bd"].shape          # (G*Cin, G*Cout)
    G = GCin // Cin
    PG = P // G
    Cout = KC // G
    E = params["b1"].shape[1]
    F = P * Cout

    # --- glue: one small f32 XLA fusion (transpose+concat+regroup); no bf16
    # cast here — the cast happens in-kernel after the load.
    a = jnp.transpose(action_nchw, (0, 2, 3, 1)).astype(jnp.float32)      # (N,H,W,A)
    sa = jnp.concatenate([state_nhwc.astype(jnp.float32), a], axis=-1)    # (N,H,W,Cin)
    sa = sa.reshape(N, PG, GCin)          # free: (p,cin) -> (pg, g*Cin+cin)
    sa = jnp.transpose(sa, (1, 0, 2))     # (PG, N, G*Cin): chunk axis leading

    # --- batch-row tiling ------------------------------------------------------
    if N >= 16:
        # >=2 tiles (use both v7x TensorCores), each a multiple of 8 rows,
        # capped at 256 rows to fill the 256-wide MXU of v6e/v7x.
        TB = min(256, ((N + 15) // 16) * 8)
        N_pad = ((N + TB - 1) // TB) * TB
    else:
        TB, N_pad = N, N
    n_tiles = N_pad // TB
    if N_pad != N:
        sa = jnp.pad(sa, ((0, 0), (0, N_pad - N), (0, 0)))

    kernel = _make_fused_kernel(PG)
    args = (sa, params["w_bd"], params["conv_b"], params["w1"], params["b1"],
            params["w2"], params["b2"], params["w5"], params["b5"])

    flops = 2 * N_pad * (P * Cin * Cout + F * E + E * (2 * E) + (2 * E) * E)
    param_bytes = sum(int(v.size) * v.dtype.itemsize for v in args[1:])
    cost = pl.CostEstimate(
        flops=int(flops),
        transcendentals=0,
        bytes_accessed=int(sa.size) * 4 + param_bytes + N_pad * E * 4,
    )
    out_shape = jax.ShapeDtypeStruct((N_pad, E), jnp.float32)

    if n_tiles == 1:
        # Single tile: skip the grid / pipelining machinery entirely; whole
        # arrays live in VMEM for the duration of the kernel.
        out = pl.pallas_call(
            kernel,
            out_shape=out_shape,
            in_specs=[pl.BlockSpec(memory_space=pltpu.MemorySpace.VMEM)
                      for _ in args],
            out_specs=pl.BlockSpec(memory_space=pltpu.MemorySpace.VMEM),
            cost_estimate=cost,
        )(*args)
    else:
        out = pl.pallas_call(
            kernel,
            out_shape=out_shape,
            grid=(n_tiles,),
            in_specs=[
                pl.BlockSpec((PG, TB, GCin), lambda i: (0, i, 0)),
                pl.BlockSpec((GCin, KC), lambda i: (0, 0)),        # weights: constant
                pl.BlockSpec((1, KC), lambda i: (0, 0)),           # index maps ->
                pl.BlockSpec((PG, KC, E), lambda i: (0, 0, 0)),    # VMEM-resident
                pl.BlockSpec((1, E), lambda i: (0, 0)),            # across row tiles
                pl.BlockSpec((E, 2 * E), lambda i: (0, 0)),
                pl.BlockSpec((1, 2 * E), lambda i: (0, 0)),
                pl.BlockSpec((2 * E, E), lambda i: (0, 0)),
                pl.BlockSpec((1, E), lambda i: (0, 0)),
            ],
            out_specs=pl.BlockSpec((TB, E), lambda i: (i, 0)),
            compiler_params=pltpu.CompilerParams(
                dimension_semantics=("parallel",)),
            cost_estimate=cost,
        )(*args)

    return out[:N] if N_pad != N else out


# ---------------------------------------------------------------------------
# Deterministic synthetic parameters (PyTorch layouts -> kernel layouts)
# ---------------------------------------------------------------------------

def make_params(key, input_dim, action_size, num_channels, embed_dim):
    C, H, W = input_dim
    Cin = C + action_size
    P = H * W
    F = P * num_channels
    G = _pixel_group(P, num_channels)
    PG = P // G
    KC = G * num_channels
    ks = jax.random.split(key, 8)
    u = lambda k, s: jax.random.uniform(k, s, jnp.float32, minval=-0.1, maxval=0.1)

    raw = {
        "conv_w": u(ks[0], (num_channels, Cin, 1, 1)),      # torch Conv2d weight
        "conv_b": u(ks[1], (num_channels,)),
        "fc1_w": u(ks[2], (embed_dim, F)),                  # torch Linear (out, in)
        "fc1_b": u(ks[3], (embed_dim,)),
        "fc2_w": u(ks[4], (2 * embed_dim, embed_dim)),
        "fc2_b": u(ks[5], (2 * embed_dim,)),
        "fc5_w": u(ks[6], (embed_dim, 2 * embed_dim)),
        "fc5_b": u(ks[7], (embed_dim,)),
    }

    conv_w = raw["conv_w"][:, :, 0, 0].T                    # (Cin, Cout)
    # Block-diagonal conv weight: one (G*Cin, G*Cout) matmul applies the 1x1
    # conv to G consecutive pixels at once -> lane-dense 128-wide chunk output.
    w_bd = jnp.kron(jnp.eye(G, dtype=jnp.float32), conv_w)  # (G*Cin, G*Cout)
    cb = jnp.tile(raw["conv_b"], G).reshape(1, KC)           # f32 (1, G*Cout)

    # fc1 columns are indexed (c, h, w) in PyTorch; permute to pixel-major
    # (h, w, c) and split into PG chunks of K = G*Cout to match the kernel.
    w1_pm = (raw["fc1_w"]
             .reshape(embed_dim, num_channels, H, W)
             .transpose(0, 2, 3, 1)
             .reshape(embed_dim, F)
             .T)                                             # (F, E), rows (p, c)
    w1 = w1_pm.reshape(PG, KC, embed_dim)                    # (PG, G*Cout, E)

    params = {
        "w_bd": w_bd.astype(jnp.bfloat16),                   # (G*Cin, G*Cout)
        "conv_b": cb,                                        # f32 (1, G*Cout)
        "w1": w1.astype(jnp.bfloat16),                       # (PG, G*Cout, E)
        "b1": raw["fc1_b"].reshape(1, -1),                   # f32
        "w2": raw["fc2_w"].T.astype(jnp.bfloat16),           # (E, 2E)
        "b2": raw["fc2_b"].reshape(1, -1),
        "w5": raw["fc5_w"].T.astype(jnp.bfloat16),           # (2E, E)
        "b5": raw["fc5_b"].reshape(1, -1),
    }
    return raw, params


def reference_forward(state_nhwc, action_nchw, raw):
    """Plain-JAX replica of the PyTorch forward (NCHW, f32) for verification."""
    s = jnp.transpose(state_nhwc, (0, 3, 1, 2)).astype(jnp.float32)
    sa = jnp.concatenate([s, action_nchw.astype(jnp.float32)], axis=1)   # (N,Cin,H,W)
    y = jnp.einsum("ncHW,oc->noHW", sa, raw["conv_w"][:, :, 0, 0])
    y = y + raw["conv_b"][None, :, None, None]
    y = jnp.maximum(y, 0.0)
    x = y.reshape(y.shape[0], -1)                                        # (C,H,W) flatten
    x = jnp.maximum(x @ raw["fc1_w"].T + raw["fc1_b"], 0.0)
    x = jnp.maximum(x @ raw["fc2_w"].T + raw["fc2_b"], 0.0)
    x = jnp.maximum(x @ raw["fc5_w"].T + raw["fc5_b"], 0.0)
    return x


# ---------------------------------------------------------------------------

if __name__ == "__main__":
    # Small shapes consistent with the module: input_dim = (C=4, H=8, W=8),
    # action_size=4, num_channels=32, state_action_embed_dim=128, batch=2.
    N, C, H, W = 2, 4, 8, 8
    action_size = 4
    num_channels = 32
    embed_dim = 128

    key = jax.random.PRNGKey(0)
    k_state, k_action, k_params = jax.random.split(key, 3)

    state = jax.random.uniform(k_state, (N, H, W, C), jnp.float32)                 # NHWC
    action_2d = jax.random.uniform(k_action, (N, action_size, H, W), jnp.float32)  # NCHW

    raw, params = make_params(k_params, (C, H, W), action_size, num_channels, embed_dim)

    out = jax.block_until_ready(state_action_encoder(state, action_2d, params))

    ref = reference_forward(state, action_2d, raw)
    assert out.shape == (N, embed_dim) and out.dtype == jnp.float32
    # bf16 weights / bf16 matmul inputs with f32 accumulation: ~1e-2 agreement
    # with the f32 reference is expected and intentional.
    assert jnp.allclose(out, ref, rtol=2e-2, atol=2e-2), "mismatch vs reference"

    print("KERNEL_OK")
</pallas_src>

<mosaic_0001>
module attributes {stable_mosaic.version = 11 : i64} {
  func.func @kernel(%arg0: memref<16x2x32xf32, #tpu.memory_space<vmem>>, %arg1: memref<32x128xbf16, #tpu.memory_space<vmem>>, %arg2: memref<1x128xf32, #tpu.memory_space<vmem>>, %arg3: memref<16x128x128xbf16, #tpu.memory_space<vmem>>, %arg4: memref<1x128xf32, #tpu.memory_space<vmem>>, %arg5: memref<128x256xbf16, #tpu.memory_space<vmem>>, %arg6: memref<1x256xf32, #tpu.memory_space<vmem>>, %arg7: memref<256x128xbf16, #tpu.memory_space<vmem>>, %arg8: memref<1x128xf32, #tpu.memory_space<vmem>>, %arg9: memref<2x128xf32, #tpu.memory_space<vmem>>) attributes {dimension_semantics = [], scalar_prefetch = 0 : i64, scratch_operands = 0 : i64, tpu.core_type = #tpu.core_type<tc>} {
    %c0 = arith.constant 0 : index
    %c0_0 = arith.constant 0 : index
    %0 = vector.load %arg1[%c0, %c0_0] : memref<32x128xbf16, #tpu.memory_space<vmem>>, vector<32x128xbf16>
    %c0_1 = arith.constant 0 : index
    %c0_2 = arith.constant 0 : index
    %1 = vector.load %arg2[%c0_1, %c0_2] : memref<1x128xf32, #tpu.memory_space<vmem>>, vector<1x128xf32>
    %cst = arith.constant 0.000000e+00 : f32
    %2 = vector.broadcast %cst : f32 to vector<2x128xf32>
    %c0_3 = arith.constant 0 : index
    %c0_4 = arith.constant 0 : index
    %c0_5 = arith.constant 0 : index
    %3 = vector.load %arg0[%c0_3, %c0_4, %c0_5] : memref<16x2x32xf32, #tpu.memory_space<vmem>>, vector<1x2x32xf32>
    %4 = vector.shape_cast %3 : vector<1x2x32xf32> to vector<2x32xf32>
    %5 = arith.truncf %4 : vector<2x32xf32> to vector<2x32xbf16>
    %cst_6 = arith.constant dense<0.000000e+00> : vector<2x128xf32>
    %6 = tpu.matmul %5, %0, %cst_6 {dimension_numbers = #tpu.dot_dimension_numbers<[1], [0], [0], [1], [0, 0, 1, 1], [], []>} : vector<2x32xbf16>, vector<32x128xbf16>, vector<2x128xf32> -> vector<2x128xf32>
    %7 = vector.broadcast %1 : vector<1x128xf32> to vector<2x128xf32>
    %8 = arith.addf %6, %7 : vector<2x128xf32>
    %cst_7 = arith.constant 0.000000e+00 : f32
    %9 = vector.broadcast %cst_7 : f32 to vector<2x128xf32>
    %10 = arith.maximumf %8, %9 : vector<2x128xf32>
    %11 = arith.truncf %10 : vector<2x128xf32> to vector<2x128xbf16>
    %c0_8 = arith.constant 0 : index
    %c0_9 = arith.constant 0 : index
    %c0_10 = arith.constant 0 : index
    %12 = vector.load %arg3[%c0_8, %c0_9, %c0_10] : memref<16x128x128xbf16, #tpu.memory_space<vmem>>, vector<1x128x128xbf16>
    %13 = vector.shape_cast %12 : vector<1x128x128xbf16> to vector<128x128xbf16>
    %cst_11 = arith.constant dense<0.000000e+00> : vector<2x128xf32>
    %14 = tpu.matmul %11, %13, %cst_11 {dimension_numbers = #tpu.dot_dimension_numbers<[1], [0], [0], [1], [0, 0, 1, 1], [], []>} : vector<2x128xbf16>, vector<128x128xbf16>, vector<2x128xf32> -> vector<2x128xf32>
    %15 = arith.addf %2, %14 : vector<2x128xf32>
    %c1 = arith.constant 1 : index
    %c0_12 = arith.constant 0 : index
    %c0_13 = arith.constant 0 : index
    %16 = vector.load %arg0[%c1, %c0_12, %c0_13] : memref<16x2x32xf32, #tpu.memory_space<vmem>>, vector<1x2x32xf32>
    %17 = vector.shape_cast %16 : vector<1x2x32xf32> to vector<2x32xf32>
    %18 = arith.truncf %17 : vector<2x32xf32> to vector<2x32xbf16>
    %cst_14 = arith.constant dense<0.000000e+00> : vector<2x128xf32>
    %19 = tpu.matmul %18, %0, %cst_14 {dimension_numbers = #tpu.dot_dimension_numbers<[1], [0], [0], [1], [0, 0, 1, 1], [], []>} : vector<2x32xbf16>, vector<32x128xbf16>, vector<2x128xf32> -> vector<2x128xf32>
    %20 = vector.broadcast %1 : vector<1x128xf32> to vector<2x128xf32>
    %21 = arith.addf %19, %20 : vector<2x128xf32>
    %cst_15 = arith.constant 0.000000e+00 : f32
    %22 = vector.broadcast %cst_15 : f32 to vector<2x128xf32>
    %23 = arith.maximumf %21, %22 : vector<2x128xf32>
    %24 = arith.truncf %23 : vector<2x128xf32> to vector<2x128xbf16>
    %c1_16 = arith.constant 1 : index
    %c0_17 = arith.constant 0 : index
    %c0_18 = arith.constant 0 : index
    %25 = vector.load %arg3[%c1_16, %c0_17, %c0_18] : memref<16x128x128xbf16, #tpu.memory_space<vmem>>, vector<1x128x128xbf16>
    %26 = vector.shape_cast %25 : vector<1x128x128xbf16> to vector<128x128xbf16>
    %cst_19 = arith.constant dense<0.000000e+00> : vector<2x128xf32>
    %27 = tpu.matmul %24, %26, %cst_19 {dimension_numbers = #tpu.dot_dimension_numbers<[1], [0], [0], [1], [0, 0, 1, 1], [], []>} : vector<2x128xbf16>, vector<128x128xbf16>, vector<2x128xf32> -> vector<2x128xf32>
    %28 = arith.addf %15, %27 : vector<2x128xf32>
    %c2 = arith.constant 2 : index
    %c0_20 = arith.constant 0 : index
    %c0_21 = arith.constant 0 : index
    %29 = vector.load %arg0[%c2, %c0_20, %c0_21] : memref<16x2x32xf32, #tpu.memory_space<vmem>>, vector<1x2x32xf32>
    %30 = vector.shape_cast %29 : vector<1x2x32xf32> to vector<2x32xf32>
    %31 = arith.truncf %30 : vector<2x32xf32> to vector<2x32xbf16>
    %cst_22 = arith.constant dense<0.000000e+00> : vector<2x128xf32>
    %32 = tpu.matmul %31, %0, %cst_22 {dimension_numbers = #tpu.dot_dimension_numbers<[1], [0], [0], [1], [0, 0, 1, 1], [], []>} : vector<2x32xbf16>, vector<32x128xbf16>, vector<2x128xf32> -> vector<2x128xf32>
    %33 = vector.broadcast %1 : vector<1x128xf32> to vector<2x128xf32>
    %34 = arith.addf %32, %33 : vector<2x128xf32>
    %cst_23 = arith.constant 0.000000e+00 : f32
    %35 = vector.broadcast %cst_23 : f32 to vector<2x128xf32>
    %36 = arith.maximumf %34, %35 : vector<2x128xf32>
    %37 = arith.truncf %36 : vector<2x128xf32> to vector<2x128xbf16>
    %c2_24 = arith.constant 2 : index
    %c0_25 = arith.constant 0 : index
    %c0_26 = arith.constant 0 : index
    %38 = vector.load %arg3[%c2_24, %c0_25, %c0_26] : memref<16x128x128xbf16, #tpu.memory_space<vmem>>, vector<1x128x128xbf16>
    %39 = vector.shape_cast %38 : vector<1x128x128xbf16> to vector<128x128xbf16>
    %cst_27 = arith.constant dense<0.000000e+00> : vector<2x128xf32>
    %40 = tpu.matmul %37, %39, %cst_27 {dimension_numbers = #tpu.dot_dimension_numbers<[1], [0], [0], [1], [0, 0, 1, 1], [], []>} : vector<2x128xbf16>, vector<128x128xbf16>, vector<2x128xf32> -> vector<2x128xf32>
    %41 = arith.addf %28, %40 : vector<2x128xf32>
    %c3 = arith.constant 3 : index
    %c0_28 = arith.constant 0 : index
    %c0_29 = arith.constant 0 : index
    %42 = vector.load %arg0[%c3, %c0_28, %c0_29] : memref<16x2x32xf32, #tpu.memory_space<vmem>>, vector<1x2x32xf32>
    %43 = vector.shape_cast %42 : vector<1x2x32xf32> to vector<2x32xf32>
    %44 = arith.truncf %43 : vector<2x32xf32> to vector<2x32xbf16>
    %cst_30 = arith.constant dense<0.000000e+00> : vector<2x128xf32>
    %45 = tpu.matmul %44, %0, %cst_30 {dimension_numbers = #tpu.dot_dimension_numbers<[1], [0], [0], [1], [0, 0, 1, 1], [], []>} : vector<2x32xbf16>, vector<32x128xbf16>, vector<2x128xf32> -> vector<2x128xf32>
    %46 = vector.broadcast %1 : vector<1x128xf32> to vector<2x128xf32>
    %47 = arith.addf %45, %46 : vector<2x128xf32>
    %cst_31 = arith.constant 0.000000e+00 : f32
    %48 = vector.broadcast %cst_31 : f32 to vector<2x128xf32>
    %49 = arith.maximumf %47, %48 : vector<2x128xf32>
    %50 = arith.truncf %49 : vector<2x128xf32> to vector<2x128xbf16>
    %c3_32 = arith.constant 3 : index
    %c0_33 = arith.constant 0 : index
    %c0_34 = arith.constant 0 : index
    %51 = vector.load %arg3[%c3_32, %c0_33, %c0_34] : memref<16x128x128xbf16, #tpu.memory_space<vmem>>, vector<1x128x128xbf16>
    %52 = vector.shape_cast %51 : vector<1x128x128xbf16> to vector<128x128xbf16>
    %cst_35 = arith.constant dense<0.000000e+00> : vector<2x128xf32>
    %53 = tpu.matmul %50, %52, %cst_35 {dimension_numbers = #tpu.dot_dimension_numbers<[1], [0], [0], [1], [0, 0, 1, 1], [], []>} : vector<2x128xbf16>, vector<128x128xbf16>, vector<2x128xf32> -> vector<2x128xf32>
    %54 = arith.addf %41, %53 : vector<2x128xf32>
    %c4 = arith.constant 4 : index
    %c0_36 = arith.constant 0 : index
    %c0_37 = arith.constant 0 : index
    %55 = vector.load %arg0[%c4, %c0_36, %c0_37] : memref<16x2x32xf32, #tpu.memory_space<vmem>>, vector<1x2x32xf32>
    %56 = vector.shape_cast %55 : vector<1x2x32xf32> to vector<2x32xf32>
    %57 = arith.truncf %56 : vector<2x32xf32> to vector<2x32xbf16>
    %cst_38 = arith.constant dense<0.000000e+00> : vector<2x128xf32>
    %58 = tpu.matmul %57, %0, %cst_38 {dimension_numbers = #tpu.dot_dimension_numbers<[1], [0], [0], [1], [0, 0, 1, 1], [], []>} : vector<2x32xbf16>, vector<32x128xbf16>, vector<2x128xf32> -> vector<2x128xf32>
    %59 = vector.broadcast %1 : vector<1x128xf32> to vector<2x128xf32>
    %60 = arith.addf %58, %59 : vector<2x128xf32>
    %cst_39 = arith.constant 0.000000e+00 : f32
    %61 = vector.broadcast %cst_39 : f32 to vector<2x128xf32>
    %62 = arith.maximumf %60, %61 : vector<2x128xf32>
    %63 = arith.truncf %62 : vector<2x128xf32> to vector<2x128xbf16>
    %c4_40 = arith.constant 4 : index
    %c0_41 = arith.constant 0 : index
    %c0_42 = arith.constant 0 : index
    %64 = vector.load %arg3[%c4_40, %c0_41, %c0_42] : memref<16x128x128xbf16, #tpu.memory_space<vmem>>, vector<1x128x128xbf16>
    %65 = vector.shape_cast %64 : vector<1x128x128xbf16> to vector<128x128xbf16>
    %cst_43 = arith.constant dense<0.000000e+00> : vector<2x128xf32>
    %66 = tpu.matmul %63, %65, %cst_43 {dimension_numbers = #tpu.dot_dimension_numbers<[1], [0], [0], [1], [0, 0, 1, 1], [], []>} : vector<2x128xbf16>, vector<128x128xbf16>, vector<2x128xf32> -> vector<2x128xf32>
    %67 = arith.addf %54, %66 : vector<2x128xf32>
    %c5 = arith.constant 5 : index
    %c0_44 = arith.constant 0 : index
    %c0_45 = arith.constant 0 : index
    %68 = vector.load %arg0[%c5, %c0_44, %c0_45] : memref<16x2x32xf32, #tpu.memory_space<vmem>>, vector<1x2x32xf32>
    %69 = vector.shape_cast %68 : vector<1x2x32xf32> to vector<2x32xf32>
    %70 = arith.truncf %69 : vector<2x32xf32> to vector<2x32xbf16>
    %cst_46 = arith.constant dense<0.000000e+00> : vector<2x128xf32>
    %71 = tpu.matmul %70, %0, %cst_46 {dimension_numbers = #tpu.dot_dimension_numbers<[1], [0], [0], [1], [0, 0, 1, 1], [], []>} : vector<2x32xbf16>, vector<32x128xbf16>, vector<2x128xf32> -> vector<2x128xf32>
    %72 = vector.broadcast %1 : vector<1x128xf32> to vector<2x128xf32>
    %73 = arith.addf %71, %72 : vector<2x128xf32>
    %cst_47 = arith.constant 0.000000e+00 : f32
    %74 = vector.broadcast %cst_47 : f32 to vector<2x128xf32>
    %75 = arith.maximumf %73, %74 : vector<2x128xf32>
    %76 = arith.truncf %75 : vector<2x128xf32> to vector<2x128xbf16>
    %c5_48 = arith.constant 5 : index
    %c0_49 = arith.constant 0 : index
    %c0_50 = arith.constant 0 : index
    %77 = vector.load %arg3[%c5_48, %c0_49, %c0_50] : memref<16x128x128xbf16, #tpu.memory_space<vmem>>, vector<1x128x128xbf16>
    %78 = vector.shape_cast %77 : vector<1x128x128xbf16> to vector<128x128xbf16>
    %cst_51 = arith.constant dense<0.000000e+00> : vector<2x128xf32>
    %79 = tpu.matmul %76, %78, %cst_51 {dimension_numbers = #tpu.dot_dimension_numbers<[1], [0], [0], [1], [0, 0, 1, 1], [], []>} : vector<2x128xbf16>, vector<128x128xbf16>, vector<2x128xf32> -> vector<2x128xf32>
    %80 = arith.addf %67, %79 : vector<2x128xf32>
    %c6 = arith.constant 6 : index
    %c0_52 = arith.constant 0 : index
    %c0_53 = arith.constant 0 : index
    %81 = vector.load %arg0[%c6, %c0_52, %c0_53] : memref<16x2x32xf32, #tpu.memory_space<vmem>>, vector<1x2x32xf32>
    %82 = vector.shape_cast %81 : vector<1x2x32xf32> to vector<2x32xf32>
    %83 = arith.truncf %82 : vector<2x32xf32> to vector<2x32xbf16>
    %cst_54 = arith.constant dense<0.000000e+00> : vector<2x128xf32>
    %84 = tpu.matmul %83, %0, %cst_54 {dimension_numbers = #tpu.dot_dimension_numbers<[1], [0], [0], [1], [0, 0, 1, 1], [], []>} : vector<2x32xbf16>, vector<32x128xbf16>, vector<2x128xf32> -> vector<2x128xf32>
    %85 = vector.broadcast %1 : vector<1x128xf32> to vector<2x128xf32>
    %86 = arith.addf %84, %85 : vector<2x128xf32>
    %cst_55 = arith.constant 0.000000e+00 : f32
    %87 = vector.broadcast %cst_55 : f32 to vector<2x128xf32>
    %88 = arith.maximumf %86, %87 : vector<2x128xf32>
    %89 = arith.truncf %88 : vector<2x128xf32> to vector<2x128xbf16>
    %c6_56 = arith.constant 6 : index
    %c0_57 = arith.constant 0 : index
    %c0_58 = arith.constant 0 : index
    %90 = vector.load %arg3[%c6_56, %c0_57, %c0_58] : memref<16x128x128xbf16, #tpu.memory_space<vmem>>, vector<1x128x128xbf16>
    %91 = vector.shape_cast %90 : vector<1x128x128xbf16> to vector<128x128xbf16>
    %cst_59 = arith.constant dense<0.000000e+00> : vector<2x128xf32>
    %92 = tpu.matmul %89, %91, %cst_59 {dimension_numbers = #tpu.dot_dimension_numbers<[1], [0], [0], [1], [0, 0, 1, 1], [], []>} : vector<2x128xbf16>, vector<128x128xbf16>, vector<2x128xf32> -> vector<2x128xf32>
    %93 = arith.addf %80, %92 : vector<2x128xf32>
    %c7 = arith.constant 7 : index
    %c0_60 = arith.constant 0 : index
    %c0_61 = arith.constant 0 : index
    %94 = vector.load %arg0[%c7, %c0_60, %c0_61] : memref<16x2x32xf32, #tpu.memory_space<vmem>>, vector<1x2x32xf32>
    %95 = vector.shape_cast %94 : vector<1x2x32xf32> to vector<2x32xf32>
    %96 = arith.truncf %95 : vector<2x32xf32> to vector<2x32xbf16>
    %cst_62 = arith.constant dense<0.000000e+00> : vector<2x128xf32>
    %97 = tpu.matmul %96, %0, %cst_62 {dimension_numbers = #tpu.dot_dimension_numbers<[1], [0], [0], [1], [0, 0, 1, 1], [], []>} : vector<2x32xbf16>, vector<32x128xbf16>, vector<2x128xf32> -> vector<2x128xf32>
    %98 = vector.broadcast %1 : vector<1x128xf32> to vector<2x128xf32>
    %99 = arith.addf %97, %98 : vector<2x128xf32>
    %cst_63 = arith.constant 0.000000e+00 : f32
    %100 = vector.broadcast %cst_63 : f32 to vector<2x128xf32>
    %101 = arith.maximumf %99, %100 : vector<2x128xf32>
    %102 = arith.truncf %101 : vector<2x128xf32> to vector<2x128xbf16>
    %c7_64 = arith.constant 7 : index
    %c0_65 = arith.constant 0 : index
    %c0_66 = arith.constant 0 : index
    %103 = vector.load %arg3[%c7_64, %c0_65, %c0_66] : memref<16x128x128xbf16, #tpu.memory_space<vmem>>, vector<1x128x128xbf16>
    %104 = vector.shape_cast %103 : vector<1x128x128xbf16> to vector<128x128xbf16>
    %cst_67 = arith.constant dense<0.000000e+00> : vector<2x128xf32>
    %105 = tpu.matmul %102, %104, %cst_67 {dimension_numbers = #tpu.dot_dimension_numbers<[1], [0], [0], [1], [0, 0, 1, 1], [], []>} : vector<2x128xbf16>, vector<128x128xbf16>, vector<2x128xf32> -> vector<2x128xf32>
    %106 = arith.addf %93, %105 : vector<2x128xf32>
    %c8 = arith.constant 8 : index
    %c0_68 = arith.constant 0 : index
    %c0_69 = arith.constant 0 : index
    %107 = vector.load %arg0[%c8, %c0_68, %c0_69] : memref<16x2x32xf32, #tpu.memory_space<vmem>>, vector<1x2x32xf32>
    %108 = vector.shape_cast %107 : vector<1x2x32xf32> to vector<2x32xf32>
    %109 = arith.truncf %108 : vector<2x32xf32> to vector<2x32xbf16>
    %cst_70 = arith.constant dense<0.000000e+00> : vector<2x128xf32>
    %110 = tpu.matmul %109, %0, %cst_70 {dimension_numbers = #tpu.dot_dimension_numbers<[1], [0], [0], [1], [0, 0, 1, 1], [], []>} : vector<2x32xbf16>, vector<32x128xbf16>, vector<2x128xf32> -> vector<2x128xf32>
    %111 = vector.broadcast %1 : vector<1x128xf32> to vector<2x128xf32>
    %112 = arith.addf %110, %111 : vector<2x128xf32>
    %cst_71 = arith.constant 0.000000e+00 : f32
    %113 = vector.broadcast %cst_71 : f32 to vector<2x128xf32>
    %114 = arith.maximumf %112, %113 : vector<2x128xf32>
    %115 = arith.truncf %114 : vector<2x128xf32> to vector<2x128xbf16>
    %c8_72 = arith.constant 8 : index
    %c0_73 = arith.constant 0 : index
    %c0_74 = arith.constant 0 : index
    %116 = vector.load %arg3[%c8_72, %c0_73, %c0_74] : memref<16x128x128xbf16, #tpu.memory_space<vmem>>, vector<1x128x128xbf16>
    %117 = vector.shape_cast %116 : vector<1x128x128xbf16> to vector<128x128xbf16>
    %cst_75 = arith.constant dense<0.000000e+00> : vector<2x128xf32>
    %118 = tpu.matmul %115, %117, %cst_75 {dimension_numbers = #tpu.dot_dimension_numbers<[1], [0], [0], [1], [0, 0, 1, 1], [], []>} : vector<2x128xbf16>, vector<128x128xbf16>, vector<2x128xf32> -> vector<2x128xf32>
    %119 = arith.addf %106, %118 : vector<2x128xf32>
    %c9 = arith.constant 9 : index
    %c0_76 = arith.constant 0 : index
    %c0_77 = arith.constant 0 : index
    %120 = vector.load %arg0[%c9, %c0_76, %c0_77] : memref<16x2x32xf32, #tpu.memory_space<vmem>>, vector<1x2x32xf32>
    %121 = vector.shape_cast %120 : vector<1x2x32xf32> to vector<2x32xf32>
    %122 = arith.truncf %121 : vector<2x32xf32> to vector<2x32xbf16>
    %cst_78 = arith.constant dense<0.000000e+00> : vector<2x128xf32>
    %123 = tpu.matmul %122, %0, %cst_78 {dimension_numbers = #tpu.dot_dimension_numbers<[1], [0], [0], [1], [0, 0, 1, 1], [], []>} : vector<2x32xbf16>, vector<32x128xbf16>, vector<2x128xf32> -> vector<2x128xf32>
    %124 = vector.broadcast %1 : vector<1x128xf32> to vector<2x128xf32>
    %125 = arith.addf %123, %124 : vector<2x128xf32>
    %cst_79 = arith.constant 0.000000e+00 : f32
    %126 = vector.broadcast %cst_79 : f32 to vector<2x128xf32>
    %127 = arith.maximumf %125, %126 : vector<2x128xf32>
    %128 = arith.truncf %127 : vector<2x128xf32> to vector<2x128xbf16>
    %c9_80 = arith.constant 9 : index
    %c0_81 = arith.constant 0 : index
    %c0_82 = arith.constant 0 : index
    %129 = vector.load %arg3[%c9_80, %c0_81, %c0_82] : memref<16x128x128xbf16, #tpu.memory_space<vmem>>, vector<1x128x128xbf16>
    %130 = vector.shape_cast %129 : vector<1x128x128xbf16> to vector<128x128xbf16>
    %cst_83 = arith.constant dense<0.000000e+00> : vector<2x128xf32>
    %131 = tpu.matmul %128, %130, %cst_83 {dimension_numbers = #tpu.dot_dimension_numbers<[1], [0], [0], [1], [0, 0, 1, 1], [], []>} : vector<2x128xbf16>, vector<128x128xbf16>, vector<2x128xf32> -> vector<2x128xf32>
    %132 = arith.addf %119, %131 : vector<2x128xf32>
    %c10 = arith.constant 10 : index
    %c0_84 = arith.constant 0 : index
    %c0_85 = arith.constant 0 : index
    %133 = vector.load %arg0[%c10, %c0_84, %c0_85] : memref<16x2x32xf32, #tpu.memory_space<vmem>>, vector<1x2x32xf32>
    %134 = vector.shape_cast %133 : vector<1x2x32xf32> to vector<2x32xf32>
    %135 = arith.truncf %134 : vector<2x32xf32> to vector<2x32xbf16>
    %cst_86 = arith.constant dense<0.000000e+00> : vector<2x128xf32>
    %136 = tpu.matmul %135, %0, %cst_86 {dimension_numbers = #tpu.dot_dimension_numbers<[1], [0], [0], [1], [0, 0, 1, 1], [], []>} : vector<2x32xbf16>, vector<32x128xbf16>, vector<2x128xf32> -> vector<2x128xf32>
    %137 = vector.broadcast %1 : vector<1x128xf32> to vector<2x128xf32>
    %138 = arith.addf %136, %137 : vector<2x128xf32>
    %cst_87 = arith.constant 0.000000e+00 : f32
    %139 = vector.broadcast %cst_87 : f32 to vector<2x128xf32>
    %140 = arith.maximumf %138, %139 : vector<2x128xf32>
    %141 = arith.truncf %140 : vector<2x128xf32> to vector<2x128xbf16>
    %c10_88 = arith.constant 10 : index
    %c0_89 = arith.constant 0 : index
    %c0_90 = arith.constant 0 : index
    %142 = vector.load %arg3[%c10_88, %c0_89, %c0_90] : memref<16x128x128xbf16, #tpu.memory_space<vmem>>, vector<1x128x128xbf16>
    %143 = vector.shape_cast %142 : vector<1x128x128xbf16> to vector<128x128xbf16>
    %cst_91 = arith.constant dense<0.000000e+00> : vector<2x128xf32>
    %144 = tpu.matmul %141, %143, %cst_91 {dimension_numbers = #tpu.dot_dimension_numbers<[1], [0], [0], [1], [0, 0, 1, 1], [], []>} : vector<2x128xbf16>, vector<128x128xbf16>, vector<2x128xf32> -> vector<2x128xf32>
    %145 = arith.addf %132, %144 : vector<2x128xf32>
    %c11 = arith.constant 11 : index
    %c0_92 = arith.constant 0 : index
    %c0_93 = arith.constant 0 : index
    %146 = vector.load %arg0[%c11, %c0_92, %c0_93] : memref<16x2x32xf32, #tpu.memory_space<vmem>>, vector<1x2x32xf32>
    %147 = vector.shape_cast %146 : vector<1x2x32xf32> to vector<2x32xf32>
    %148 = arith.truncf %147 : vector<2x32xf32> to vector<2x32xbf16>
    %cst_94 = arith.constant dense<0.000000e+00> : vector<2x128xf32>
    %149 = tpu.matmul %148, %0, %cst_94 {dimension_numbers = #tpu.dot_dimension_numbers<[1], [0], [0], [1], [0, 0, 1, 1], [], []>} : vector<2x32xbf16>, vector<32x128xbf16>, vector<2x128xf32> -> vector<2x128xf32>
    %150 = vector.broadcast %1 : vector<1x128xf32> to vector<2x128xf32>
    %151 = arith.addf %149, %150 : vector<2x128xf32>
    %cst_95 = arith.constant 0.000000e+00 : f32
    %152 = vector.broadcast %cst_95 : f32 to vector<2x128xf32>
    %153 = arith.maximumf %151, %152 : vector<2x128xf32>
    %154 = arith.truncf %153 : vector<2x128xf32> to vector<2x128xbf16>
    %c11_96 = arith.constant 11 : index
    %c0_97 = arith.constant 0 : index
    %c0_98 = arith.constant 0 : index
    %155 = vector.load %arg3[%c11_96, %c0_97, %c0_98] : memref<16x128x128xbf16, #tpu.memory_space<vmem>>, vector<1x128x128xbf16>
    %156 = vector.shape_cast %155 : vector<1x128x128xbf16> to vector<128x128xbf16>
    %cst_99 = arith.constant dense<0.000000e+00> : vector<2x128xf32>
    %157 = tpu.matmul %154, %156, %cst_99 {dimension_numbers = #tpu.dot_dimension_numbers<[1], [0], [0], [1], [0, 0, 1, 1], [], []>} : vector<2x128xbf16>, vector<128x128xbf16>, vector<2x128xf32> -> vector<2x128xf32>
    %158 = arith.addf %145, %157 : vector<2x128xf32>
    %c12 = arith.constant 12 : index
    %c0_100 = arith.constant 0 : index
    %c0_101 = arith.constant 0 : index
    %159 = vector.load %arg0[%c12, %c0_100, %c0_101] : memref<16x2x32xf32, #tpu.memory_space<vmem>>, vector<1x2x32xf32>
    %160 = vector.shape_cast %159 : vector<1x2x32xf32> to vector<2x32xf32>
    %161 = arith.truncf %160 : vector<2x32xf32> to vector<2x32xbf16>
    %cst_102 = arith.constant dense<0.000000e+00> : vector<2x128xf32>
    %162 = tpu.matmul %161, %0, %cst_102 {dimension_numbers = #tpu.dot_dimension_numbers<[1], [0], [0], [1], [0, 0, 1, 1], [], []>} : vector<2x32xbf16>, vector<32x128xbf16>, vector<2x128xf32> -> vector<2x128xf32>
    %163 = vector.broadcast %1 : vector<1x128xf32> to vector<2x128xf32>
    %164 = arith.addf %162, %163 : vector<2x128xf32>
    %cst_103 = arith.constant 0.000000e+00 : f32
    %165 = vector.broadcast %cst_103 : f32 to vector<2x128xf32>
    %166 = arith.maximumf %164, %165 : vector<2x128xf32>
    %167 = arith.truncf %166 : vector<2x128xf32> to vector<2x128xbf16>
    %c12_104 = arith.constant 12 : index
    %c0_105 = arith.constant 0 : index
    %c0_106 = arith.constant 0 : index
    %168 = vector.load %arg3[%c12_104, %c0_105, %c0_106] : memref<16x128x128xbf16, #tpu.memory_space<vmem>>, vector<1x128x128xbf16>
    %169 = vector.shape_cast %168 : vector<1x128x128xbf16> to vector<128x128xbf16>
    %cst_107 = arith.constant dense<0.000000e+00> : vector<2x128xf32>
    %170 = tpu.matmul %167, %169, %cst_107 {dimension_numbers = #tpu.dot_dimension_numbers<[1], [0], [0], [1], [0, 0, 1, 1], [], []>} : vector<2x128xbf16>, vector<128x128xbf16>, vector<2x128xf32> -> vector<2x128xf32>
    %171 = arith.addf %158, %170 : vector<2x128xf32>
    %c13 = arith.constant 13 : index
    %c0_108 = arith.constant 0 : index
    %c0_109 = arith.constant 0 : index
    %172 = vector.load %arg0[%c13, %c0_108, %c0_109] : memref<16x2x32xf32, #tpu.memory_space<vmem>>, vector<1x2x32xf32>
    %173 = vector.shape_cast %172 : vector<1x2x32xf32> to vector<2x32xf32>
    %174 = arith.truncf %173 : vector<2x32xf32> to vector<2x32xbf16>
    %cst_110 = arith.constant dense<0.000000e+00> : vector<2x128xf32>
    %175 = tpu.matmul %174, %0, %cst_110 {dimension_numbers = #tpu.dot_dimension_numbers<[1], [0], [0], [1], [0, 0, 1, 1], [], []>} : vector<2x32xbf16>, vector<32x128xbf16>, vector<2x128xf32> -> vector<2x128xf32>
    %176 = vector.broadcast %1 : vector<1x128xf32> to vector<2x128xf32>
    %177 = arith.addf %175, %176 : vector<2x128xf32>
    %cst_111 = arith.constant 0.000000e+00 : f32
    %178 = vector.broadcast %cst_111 : f32 to vector<2x128xf32>
    %179 = arith.maximumf %177, %178 : vector<2x128xf32>
    %180 = arith.truncf %179 : vector<2x128xf32> to vector<2x128xbf16>
    %c13_112 = arith.constant 13 : index
    %c0_113 = arith.constant 0 : index
    %c0_114 = arith.constant 0 : index
    %181 = vector.load %arg3[%c13_112, %c0_113, %c0_114] : memref<16x128x128xbf16, #tpu.memory_space<vmem>>, vector<1x128x128xbf16>
    %182 = vector.shape_cast %181 : vector<1x128x128xbf16> to vector<128x128xbf16>
    %cst_115 = arith.constant dense<0.000000e+00> : vector<2x128xf32>
    %183 = tpu.matmul %180, %182, %cst_115 {dimension_numbers = #tpu.dot_dimension_numbers<[1], [0], [0], [1], [0, 0, 1, 1], [], []>} : vector<2x128xbf16>, vector<128x128xbf16>, vector<2x128xf32> -> vector<2x128xf32>
    %184 = arith.addf %171, %183 : vector<2x128xf32>
    %c14 = arith.constant 14 : index
    %c0_116 = arith.constant 0 : index
    %c0_117 = arith.constant 0 : index
    %185 = vector.load %arg0[%c14, %c0_116, %c0_117] : memref<16x2x32xf32, #tpu.memory_space<vmem>>, vector<1x2x32xf32>
    %186 = vector.shape_cast %185 : vector<1x2x32xf32> to vector<2x32xf32>
    %187 = arith.truncf %186 : vector<2x32xf32> to vector<2x32xbf16>
    %cst_118 = arith.constant dense<0.000000e+00> : vector<2x128xf32>
    %188 = tpu.matmul %187, %0, %cst_118 {dimension_numbers = #tpu.dot_dimension_numbers<[1], [0], [0], [1], [0, 0, 1, 1], [], []>} : vector<2x32xbf16>, vector<32x128xbf16>, vector<2x128xf32> -> vector<2x128xf32>
    %189 = vector.broadcast %1 : vector<1x128xf32> to vector<2x128xf32>
    %190 = arith.addf %188, %189 : vector<2x128xf32>
    %cst_119 = arith.constant 0.000000e+00 : f32
    %191 = vector.broadcast %cst_119 : f32 to vector<2x128xf32>
    %192 = arith.maximumf %190, %191 : vector<2x128xf32>
    %193 = arith.truncf %192 : vector<2x128xf32> to vector<2x128xbf16>
    %c14_120 = arith.constant 14 : index
    %c0_121 = arith.constant 0 : index
    %c0_122 = arith.constant 0 : index
    %194 = vector.load %arg3[%c14_120, %c0_121, %c0_122] : memref<16x128x128xbf16, #tpu.memory_space<vmem>>, vector<1x128x128xbf16>
    %195 = vector.shape_cast %194 : vector<1x128x128xbf16> to vector<128x128xbf16>
    %cst_123 = arith.constant dense<0.000000e+00> : vector<2x128xf32>
    %196 = tpu.matmul %193, %195, %cst_123 {dimension_numbers = #tpu.dot_dimension_numbers<[1], [0], [0], [1], [0, 0, 1, 1], [], []>} : vector<2x128xbf16>, vector<128x128xbf16>, vector<2x128xf32> -> vector<2x128xf32>
    %197 = arith.addf %184, %196 : vector<2x128xf32>
    %c15 = arith.constant 15 : index
    %c0_124 = arith.constant 0 : index
    %c0_125 = arith.constant 0 : index
    %198 = vector.load %arg0[%c15, %c0_124, %c0_125] : memref<16x2x32xf32, #tpu.memory_space<vmem>>, vector<1x2x32xf32>
    %199 = vector.shape_cast %198 : vector<1x2x32xf32> to vector<2x32xf32>
    %200 = arith.truncf %199 : vector<2x32xf32> to vector<2x32xbf16>
    %cst_126 = arith.constant dense<0.000000e+00> : vector<2x128xf32>
    %201 = tpu.matmul %200, %0, %cst_126 {dimension_numbers = #tpu.dot_dimension_numbers<[1], [0], [0], [1], [0, 0, 1, 1], [], []>} : vector<2x32xbf16>, vector<32x128xbf16>, vector<2x128xf32> -> vector<2x128xf32>
    %202 = vector.broadcast %1 : vector<1x128xf32> to vector<2x128xf32>
    %203 = arith.addf %201, %202 : vector<2x128xf32>
    %cst_127 = arith.constant 0.000000e+00 : f32
    %204 = vector.broadcast %cst_127 : f32 to vector<2x128xf32>
    %205 = arith.maximumf %203, %204 : vector<2x128xf32>
    %206 = arith.truncf %205 : vector<2x128xf32> to vector<2x128xbf16>
    %c15_128 = arith.constant 15 : index
    %c0_129 = arith.constant 0 : index
    %c0_130 = arith.constant 0 : index
    %207 = vector.load %arg3[%c15_128, %c0_129, %c0_130] : memref<16x128x128xbf16, #tpu.memory_space<vmem>>, vector<1x128x128xbf16>
    %208 = vector.shape_cast %207 : vector<1x128x128xbf16> to vector<128x128xbf16>
    %cst_131 = arith.constant dense<0.000000e+00> : vector<2x128xf32>
    %209 = tpu.matmul %206, %208, %cst_131 {dimension_numbers = #tpu.dot_dimension_numbers<[1], [0], [0], [1], [0, 0, 1, 1], [], []>} : vector<2x128xbf16>, vector<128x128xbf16>, vector<2x128xf32> -> vector<2x128xf32>
    %210 = arith.addf %197, %209 : vector<2x128xf32>
    %c0_132 = arith.constant 0 : index
    %c0_133 = arith.constant 0 : index
    %211 = vector.load %arg4[%c0_132, %c0_133] : memref<1x128xf32, #tpu.memory_space<vmem>>, vector<1x128xf32>
    %212 = vector.broadcast %211 : vector<1x128xf32> to vector<2x128xf32>
    %213 = arith.addf %210, %212 : vector<2x128xf32>
    %cst_134 = arith.constant 0.000000e+00 : f32
    %214 = vector.broadcast %cst_134 : f32 to vector<2x128xf32>
    %215 = arith.maximumf %213, %214 : vector<2x128xf32>
    %216 = arith.truncf %215 : vector<2x128xf32> to vector<2x128xbf16>
    %c0_135 = arith.constant 0 : index
    %c0_136 = arith.constant 0 : index
    %217 = vector.load %arg5[%c0_135, %c0_136] : memref<128x256xbf16, #tpu.memory_space<vmem>>, vector<128x256xbf16>
    %cst_137 = arith.constant dense<0.000000e+00> : vector<2x256xf32>
    %218 = tpu.matmul %216, %217, %cst_137 {dimension_numbers = #tpu.dot_dimension_numbers<[1], [0], [0], [1], [0, 0, 1, 1], [], []>} : vector<2x128xbf16>, vector<128x256xbf16>, vector<2x256xf32> -> vector<2x256xf32>
    %c0_138 = arith.constant 0 : index
    %c0_139 = arith.constant 0 : index
    %219 = vector.load %arg6[%c0_138, %c0_139] : memref<1x256xf32, #tpu.memory_space<vmem>>, vector<1x256xf32>
    %220 = vector.broadcast %219 : vector<1x256xf32> to vector<2x256xf32>
    %221 = arith.addf %218, %220 : vector<2x256xf32>
    %cst_140 = arith.constant 0.000000e+00 : f32
    %222 = vector.broadcast %cst_140 : f32 to vector<2x256xf32>
    %223 = arith.maximumf %221, %222 : vector<2x256xf32>
    %224 = arith.truncf %223 : vector<2x256xf32> to vector<2x256xbf16>
    %c0_141 = arith.constant 0 : index
    %c0_142 = arith.constant 0 : index
    %225 = vector.load %arg7[%c0_141, %c0_142] : memref<256x128xbf16, #tpu.memory_space<vmem>>, vector<256x128xbf16>
    %cst_143 = arith.constant dense<0.000000e+00> : vector<2x128xf32>
    %226 = tpu.matmul %224, %225, %cst_143 {dimension_numbers = #tpu.dot_dimension_numbers<[1], [0], [0], [1], [0, 0, 1, 1], [], []>} : vector<2x256xbf16>, vector<256x128xbf16>, vector<2x128xf32> -> vector<2x128xf32>
    %c0_144 = arith.constant 0 : index
    %c0_145 = arith.constant 0 : index
    %227 = vector.load %arg8[%c0_144, %c0_145] : memref<1x128xf32, #tpu.memory_space<vmem>>, vector<1x128xf32>
    %228 = vector.broadcast %227 : vector<1x128xf32> to vector<2x128xf32>
    %229 = arith.addf %226, %228 : vector<2x128xf32>
    %cst_146 = arith.constant 0.000000e+00 : f32
    %230 = vector.broadcast %cst_146 : f32 to vector<2x128xf32>
    %231 = arith.maximumf %229, %230 : vector<2x128xf32>
    %c0_147 = arith.constant 0 : index
    %c0_148 = arith.constant 0 : index
    %232 = vector.load %arg9[%c0_147, %c0_148] : memref<2x128xf32, #tpu.memory_space<vmem>>, vector<2x128xf32>
    tpu.vector_store %arg9[%c0_147, %c0_148], %231 {strides = array<i32>} : memref<2x128xf32, #tpu.memory_space<vmem>>, vector<2x128xf32>,
    return
  }
}

</mosaic_0001>

<bundles_post_ra>
// kernel: tpu_custom_call.1
= control target key start
LH: loop header
LB: loop body
LE: loop exit
PB: predicated region body
PF: predicated region fallthrough
CT: control target
= control target key end

     0   :  { %14 = vsyncpa [#allocation3], 0  ;;  %s4530_s0 = inlined_call_operand.hbm [shape: f32[16,2,32], index: 0, kind: input, shape index: {}]   ;;  %s4531_s1 = inlined_call_operand.hbm [shape: bf16[32,128], index: 1, kind: input, shape index: {}]   ;;  %s4532_s2 = inlined_call_operand.vmem [shape: f32[1,128], index: 2, kind: input, shape index: {}]   ;;  %s4533_s3 = inlined_call_operand.hbm [shape: bf16[16,128,128], index: 3, kind: input, shape index: {}]   ;;  %s4534_s4 = inlined_call_operand.vmem [shape: f32[1,128], index: 4, kind: input, shape index: {}]   ;;  %s4535_s5 = inlined_call_operand.hbm [shape: bf16[128,256], index: 5, kind: input, shape index: {}]   ;;  %s4536_s6 = inlined_call_operand.vmem [shape: f32[1,256], index: 6, kind: input, shape index: {}]   ;;  %s4537_s7 = inlined_call_operand.hbm [shape: bf16[256,128], index: 7, kind: input, shape index: {}]   ;;  %s4538_s8 = inlined_call_operand.vmem [shape: f32[1,128], index: 8, kind: input, shape index: {}]   ;;  %s4539_s9 = inlined_call_operand.hbm [shape: f32[2,128], index: 9, kind: output, shape index: {}]  }
   0x1   :  { %15 = vsyncpa [#allocation6], 0 }
   0x2   :  { %16 = vsyncpa [#allocation9], 0 }
   0x3   :  { %17 = vsyncpa [#allocation4], 0  ;;  %s4102_s30 = smov [#allocation5]  }
   0x4   :  { %s35_s10 = sshll.u32 %s4102_s30, 4  ;;  %s36_s10 = int_to_ptr.vmem [resolvable:$true] %s35_s10 }
   0x5   :  { %s3982_s11 = scalar_lea.vmem %s36_s10, 256  ;;  %p3987_p1 = scmp.lt.s32.totalorder %s36_s10, %s36_s10 }
   0x6   :  { %p3983_p0 = scmp.ne.s32.totalorder %s36_s10, %s3982_s11  ;;  %p3988_p2 = scmp.lt.s32.totalorder %s3982_s11, %s3982_s11 }
   0x8   :  { %p3989_p3 = por %p3988_p2, %p3987_p1 }
   0xa   :  { %p3990_p4 = pnand %p3989_p3, %p3983_p0 }
   0xc   :  { %3993 = shalt.err (!%p3990_p4)
}
   0xd   :  { %s4103_s12 = smov 64   ;;  %s4104_s13 = smov 4  }
   0xe   :  { %41 = dma.hbm_to_vmem [thread:$0]  %s4531_s1, 256, %s36_s10, [#allocation6], %s4103_s12, %s4103_s12, %s4104_s13  }
   0xf   :  { %s4105_s16 = smov [#allocation8]  }
  0x10   :  { %s63_s17 = sshll.u32 %s4105_s16, 4  ;;  %s64_s17 = int_to_ptr.vmem [resolvable:$true] %s63_s17 }
  0x11   :  { %s4002_s18 = scalar_lea.vmem %s64_s17, 2048  ;;  %p4007_p6 = scmp.lt.s32.totalorder %s64_s17, %s64_s17 }
  0x12   :  { %p4003_p5 = scmp.ne.s32.totalorder %s64_s17, %s4002_s18  ;;  %p4008_p7 = scmp.lt.s32.totalorder %s4002_s18, %s4002_s18 }
  0x14   :  { %p4009_p8 = por %p4008_p7, %p4007_p6 }
  0x16   :  { %p4010_p9 = pnand %p4009_p8, %p4003_p5 }
  0x18   :  { %4013 = shalt.err (!%p4010_p9)
}
  0x19   :  { %s4106_s19 = smov 128   ;;  %s4107_s20 = smov 8  }
  0x1a   :  { %69 = dma.hbm_to_vmem [thread:$0]  %s4535_s5, 2048, %s64_s17, [#allocation9], %s4106_s19, %s4106_s19, %s4107_s20  }
  0x1b   :  { %s4108_s23 = smov [#allocation2]  }
  0x1c   :  { %s23_s24 = sshll.u32 %s4108_s23, 4  ;;  %s24_s24 = int_to_ptr.vmem [resolvable:$true] %s23_s24 }
  0x1d   :  { %s4022_s1 = scalar_lea.vmem %s24_s24, 512  ;;  %p4027_p11 = scmp.lt.s32.totalorder %s24_s24, %s24_s24 }
  0x1e   :  { %p4023_p10 = scmp.ne.s32.totalorder %s24_s24, %s4022_s1  ;;  %p4028_p12 = scmp.lt.s32.totalorder %s4022_s1, %s4022_s1 }
  0x20   :  { %p4029_p13 = por %p4028_p12, %p4027_p11 }
  0x22   :  { %p4030_p0 = pnand %p4029_p13, %p4023_p10 }
  0x24   :  { %4033 = shalt.err (!%p4030_p0)
}
  0x25   :  { %s4109_s25 = smov 32   ;;  %s4110_s26 = smov 2  }
  0x26   :  { %29 = dma.hbm_to_vmem [thread:$0]  %s4530_s0, 512, %s24_s24, [#allocation3], %s4109_s25, %s4109_s25, %s4110_s26  }
  0x27   :  { %s4111_s29 = smov [#allocation7]   ;;  %s4112_s5 = smov [#allocation10]  }
  0x28   :  { %s49_s30 = sshll.u32 %s4111_s29, 4  ;;  %s77_s10 = sshll.u32 %s4112_s5, 4  ;;  %s50_s30 = int_to_ptr.vmem [resolvable:$true] %s49_s30  ;;  %s78_s10 = int_to_ptr.vmem [resolvable:$true] %s77_s10 }
  0x29   :  { %s4042_s11 = scalar_lea.vmem %s50_s30, 16384  ;;  %p4047_p2 = scmp.lt.s32.totalorder %s50_s30, %s50_s30 }
  0x2a   :  { %p4043_p1 = scmp.ne.s32.totalorder %s50_s30, %s4042_s11  ;;  %p4048_p3 = scmp.lt.s32.totalorder %s4042_s11, %s4042_s11 }
  0x2c   :  { %p4049_p4 = por %p4048_p3, %p4047_p2 }
  0x2e   :  { %p4050_p5 = pnand %p4049_p4, %p4043_p1 }
  0x30   :  { %4053 = shalt.err (!%p4050_p5)
}
  0x31   :  { %55 = dma.hbm_to_vmem [thread:$0]  %s4533_s3, 16384, %s50_s30, [#allocation6], %s4103_s12, %s4103_s12, %s4104_s13  }
  0x32   :  { %s4062_s0 = scalar_lea.vmem %s78_s10, 2048  ;;  %p4067_p7 = scmp.lt.s32.totalorder %s78_s10, %s78_s10 }
  0x33   :  { %p4063_p6 = scmp.ne.s32.totalorder %s78_s10, %s4062_s0  ;;  %p4068_p8 = scmp.lt.s32.totalorder %s4062_s0, %s4062_s0 }
  0x35   :  { %p4069_p9 = por %p4068_p8, %p4067_p7 }
  0x37   :  { %p4070_p10 = pnand %p4069_p9, %p4063_p6 }
  0x39   :  { %4073 = shalt.err (!%p4070_p10)
}
  0x3a   :  { %83 = dma.hbm_to_vmem [thread:$0]  %s4537_s7, 2048, %s78_s10, [#allocation9], %s4103_s12, %s4103_s12, %s4104_s13  }
  0x3b   :  { %4094 = dma.done.wait [#allocation3], 512  }
  0x3c   :  { %4095 = vsyncadd [#allocation3], 4294966784 }
  0x3d   :  { %4096 = dma.done.wait [#allocation6], 16640  }
  0x3e   :  { %4097 = vsyncadd [#allocation6], 4294950656 }
  0x3f   :  { %4098 = dma.done.wait [#allocation9], 4096  }
  0x40   :  { %4099 = vsyncadd [#allocation9], 4294963200  ;;  %v4113_v0 = vmov 0.0   ;;  %vm4114_vm0 = vmmov 0   ;;  %v4197_v1 = vld [vmem:[#allocation5 + $0x8] sm:$0xff]   ;;  %v4200_v2 = vld [vmem:[#allocation5] sm:$0xff]  }
  0x41   :  { %3338 = vmatprep.subr.bf16.mxu1 %v4113_v0  ;;  %3342 = vmatprep.mubr.msk.bf16.mxu1 %vm4114_vm0, %v4113_v0  ;;  %v107_v3 = vld [vmem:[#allocation2] sm:$0x3]  ;;  %v3805_v5 = vld [vmem:[#allocation7 + $0x78] sm:$0xff]   ;;  %vm127_vm1 = vcmask 261120   ;;  %v190_v7 = vld [vmem:[#allocation2 + $0x2] sm:$0x3] }
  0x42   :  { %3354 = vmatprep.subr.bf16.mxu0 %v4113_v0  ;;  %3370 = vmatprep.mubr.msk.bf16.mxu0 %vm4114_vm0, %v4113_v0  ;;  %v108_v4 = vpack.c.bf16 %v107_v3, %v107_v3  ;;  %v3807_v6 = vld [vmem:[#allocation7 + $0x70] sm:$0xff]   ;;  %v3809_v8 = vld [vmem:[#allocation7 + $0x68] sm:$0xff]   ;;  %v3803_v9 = vld [vmem:[#allocation7 + $0x38] sm:$0xff]   ;;  %v191_v10 = vpack.c.bf16 %v190_v7, %v190_v7 }
  0x43   :  { %3339 = vmatpush3.bf16.msra.mxu1 %v4197_v1  ;;  %3355 = vmatpush3.bf16.msra.mxu0 %v3805_v5  ;;  %v3811_v11 = vld [vmem:[#allocation7 + $0x60] sm:$0xff]   ;;  %v3804_v12 = vld [vmem:[#allocation7 + $0x30] sm:$0xff]   ;;  %v3806_v13 = vld [vmem:[#allocation7 + $0x28] sm:$0xff]  }
  0x44   :  { %3340 = vmatprep.subr.bf16.mxu1 %v4113_v0  ;;  %3356 = vmatprep.subr.bf16.mxu0 %v4113_v0  ;;  %v3808_v14 = vld [vmem:[#allocation7 + $0x20] sm:$0xff]   ;;  %v3810_v15 = vld [vmem:[#allocation7 + $0x18] sm:$0xff]   ;;  %v3812_v16 = vld [vmem:[#allocation7 + $0x10] sm:$0xff]  }
  0x45   :  { %v3813_v17 = vld [vmem:[#allocation7 + $0x58] sm:$0xff]   ;;  %v3814_v18 = vld [vmem:[#allocation7 + $0x8] sm:$0xff]   ;;  %v3815_v19 = vld [vmem:[#allocation7 + $0x50] sm:$0xff]  }
  0x46   :  { %v3816_v20 = vld [vmem:[#allocation7] sm:$0xff]   ;;  %v3817_v21 = vld [vmem:[#allocation7 + $0x48] sm:$0xff]   ;;  %v4234_v23 = vld [vmem:[%s4532_s2] ss:$0 sm:$0xff] }
  0x47   :  { %3341 = vmatpush3.bf16.msra.mxu1 %v4200_v2  ;;  %3357 = vmatpush3.bf16.msra.mxu0 %v3807_v6  ;;  %v3818_v22 = vld [vmem:[#allocation7 + $0x40] sm:$0xff]   ;;  %v3819_v29 = vld [vmem:[#allocation7 + $0xb8] sm:$0xff]   ;;  %v3820_v33 = vld [vmem:[#allocation7 + $0xb0] sm:$0xff]  }
  0x48   :  { %3346 = vmatprep.subr.bf16.mxu1 %v4113_v0  ;;  %3358 = vmatprep.subr.bf16.mxu0 %v4113_v0  ;;  %v431_v40 = vld [vmem:[#allocation2 + $0x4] sm:$0x3]  ;;  %v585_v42 = vld [vmem:[#allocation2 + $0x6] sm:$0x3]  ;;  %v3821_v44 = vld [vmem:[#allocation7 + $0xa8] sm:$0xff]  }
  0x49   :  { %v432_v41 = vpack.c.bf16 %v431_v40, %v431_v40  ;;  %v586_v43 = vpack.c.bf16 %v585_v42, %v585_v42  ;;  %v3822_v45 = vld [vmem:[#allocation7 + $0xf8] sm:$0xff]   ;;  %v3823_v46 = vld [vmem:[#allocation7 + $0xa0] sm:$0xff]   ;;  %v3824_v47 = vld [vmem:[#allocation7 + $0xf0] sm:$0xff]  }
  0x4a   :  { %3343 = vmatmul.mubr.msk.bf16.vlgmr.msra.gmra.mxu1 %vm127_vm1, %v108_v4  ;;  %v3825_v48 = vld [vmem:[#allocation7 + $0x98] sm:$0xff]   ;;  %v3826_v49 = vld [vmem:[#allocation7 + $0xe8] sm:$0xff]   ;;  %v3827_v50 = vld [vmem:[#allocation7 + $0x90] sm:$0xff]  }
  0x4b   :  { %3347 = vmatpush3.bf16.msra.mxu1 %v4197_v1  ;;  %3350 = vmatprep.mubr.msk.bf16.mxu1 %vm4114_vm0, %v4113_v0  ;;  %v3828_v51 = vld [vmem:[#allocation7 + $0xe0] sm:$0xff]   ;;  %v3829_v52 = vld [vmem:[#allocation7 + $0x88] sm:$0xff]   ;;  %v3830_v53 = vld [vmem:[#allocation7 + $0xd8] sm:$0xff]  }
  0x4c   :  { %3348 = vmatprep.subr.bf16.mxu1 %v4113_v0  ;;  %3359 = vmatpush3.bf16.msra.mxu0 %v3809_v8  ;;  %v3831_v54 = vld [vmem:[#allocation7 + $0x80] sm:$0xff]   ;;  %v3832_v55 = vld [vmem:[#allocation7 + $0xd0] sm:$0xff]   ;;  %v3833_v56 = vld [vmem:[#allocation7 + $0xc8] sm:$0xff]  }
  0x4d   :  { %3360 = vmatprep.subr.bf16.mxu0 %v4113_v0  ;;  %v3834_v57 = vld [vmem:[#allocation7 + $0xc0] sm:$0xff]  }
  0x4f   :  { %3349 = vmatpush3.bf16.msra.mxu1 %v4200_v2 }
  0x50   :  { %3374 = vmatprep.subr.bf16.mxu1 %v4113_v0  ;;  %3361 = vmatpush3.bf16.msra.mxu0 %v3811_v11 }
  0x51   :  { %3362 = vmatprep.subr.bf16.mxu0 %v4113_v0 }
  0x52   :  { %3351 = vmatmul.mubr.msk.bf16.vlgmr.msra.gmra.mxu1 %vm127_vm1, %v191_v10 }
  0x53   :  { %3375 = vmatpush3.bf16.msra.mxu1 %v3803_v9  ;;  %3390 = vmatprep.mubr.msk.bf16.mxu1 %vm4114_vm0, %v4113_v0 }
  0x54   :  { %3376 = vmatprep.subr.bf16.mxu1 %v4113_v0  ;;  %3363 = vmatpush3.bf16.msra.mxu0 %v3813_v17 }
  0x55   :  { %3364 = vmatprep.subr.bf16.mxu0 %v4113_v0 }
  0x57   :  { %3377 = vmatpush3.bf16.msra.mxu1 %v3804_v12 }
  0x58   :  { %3378 = vmatprep.subr.bf16.mxu1 %v4113_v0  ;;  %3365 = vmatpush3.bf16.msra.mxu0 %v3815_v19 }
  0x59   :  { %3366 = vmatprep.subr.bf16.mxu0 %v4113_v0 }
  0x5b   :  { %3379 = vmatpush3.bf16.msra.mxu1 %v3806_v13 }
  0x5c   :  { %3380 = vmatprep.subr.bf16.mxu1 %v4113_v0  ;;  %3367 = vmatpush3.bf16.msra.mxu0 %v3817_v21  ;;  %v3835_v21 = vld [vmem:[#allocation7 + $0x138] sm:$0xff]  }
  0x5d   :  { %3368 = vmatprep.subr.bf16.mxu0 %v4113_v0 }
  0x5f   :  { %3381 = vmatpush3.bf16.msra.mxu1 %v3808_v14  ;;  %v739_v14 = vld [vmem:[#allocation2 + $0x8] sm:$0x3] }
  0x60   :  { %3382 = vmatprep.subr.bf16.mxu1 %v4113_v0  ;;  %3369 = vmatpush3.bf16.msra.mxu0 %v3818_v22 }
  0x61   :  { %3394 = vmatprep.subr.bf16.mxu0 %v4113_v0 }
  0x63   :  { %3383 = vmatpush3.bf16.msra.mxu1 %v3810_v15 }
  0x64   :  { %3384 = vmatprep.subr.bf16.mxu1 %v4113_v0 }
  0x67   :  { %3385 = vmatpush3.bf16.msra.mxu1 %v3812_v16 }
  0x68   :  { %3386 = vmatprep.subr.bf16.mxu1 %v4113_v0 }
  0x6b   :  { %3387 = vmatpush3.bf16.msra.mxu1 %v3814_v18  ;;  %v740_v18 = vpack.c.bf16 %v739_v14, %v739_v14  ;;  %v3857_v14 = vld [vmem:[#allocation7 + $0x198] sm:$0xff]  }
  0x6c   :  { %3388 = vmatprep.subr.bf16.mxu1 %v4113_v0 }
  0x6f   :  { %3389 = vmatpush3.bf16.msra.mxu1 %v3816_v20 }
  0x70   :  { %3402 = vmatprep.subr.bf16.mxu1 %v4113_v0 }
 0x10a   :  { %v165_v24 = vpop.f32.mrf.mxu1 }
 0x10b   :  { %v166_v25 = vadd.f32 %v4234_v23, %v165_v24  ;;  %v893_v24 = vld [vmem:[#allocation2 + $0xa] sm:$0x3] }
 0x10c   :  { %v3344_v26 = vpop.f32.mrf.mxu1 }
 0x10d   :  { %v171_v27 = vmax.f32 %v166_v25, 0.0  ;;  %v3836_v25 = vld [vmem:[#allocation7 + $0x130] sm:$0xff]   ;;  %v894_v26 = vpack.c.bf16 %v893_v24, %v893_v24  ;;  %v3866_v24 = vld [vmem:[#allocation7 + $0x1c0] sm:$0xff]  }
 0x10e   :  { %v168_v28 = vpop.f32.mrf.mxu1 }
 0x10f   :  { %v172_v30 = vpack.c.bf16 %v171_v27, %v171_v27  ;;  %v3838_v27 = vld [vmem:[#allocation7 + $0x178] sm:$0xff]   ;;  %v3840_v28 = vld [vmem:[#allocation7 + $0x170] sm:$0xff]  }
 0x110   :  { %v3345_v31 = vpop.f32.mrf.mxu1 }
 0x111   :  { %3391 = vmatmul.mubr.bf16.vlgmr.msra.gmra.mxu1 %v172_v30  ;;  %v3842_v30 = vld [vmem:[#allocation7 + $0x168] sm:$0xff]   ;;  %v3843_v31 = vld [vmem:[#allocation7 + $0x110] sm:$0xff]  }
 0x112   :  { %v229_v32 = vpop.f32.mrf.mxu1  ;;  %3403 = vmatpush3.bf16.msra.mxu1 %v3819_v29  ;;  %3418 = vmatprep.mubr.msk.bf16.mxu1 %vm4114_vm0, %v4113_v0  ;;  %v3839_v29 = vld [vmem:[#allocation7 + $0x120] sm:$0xff]  }
 0x113   :  { %v230_v34 = vadd.f32 %v4234_v23, %v229_v32  ;;  %3404 = vmatprep.subr.bf16.mxu1 %v4113_v0  ;;  %v3844_v32 = vld [vmem:[#allocation7 + $0x160] sm:$0xff]  }
 0x114   :  { %v3352_v35 = vpop.f32.mrf.mxu1 }
 0x115   :  { %v235_v36 = vmax.f32 %v230_v34, 0.0  ;;  %v3846_v34 = vld [vmem:[#allocation7 + $0x158] sm:$0xff]   ;;  %v3847_v35 = vld [vmem:[#allocation7 + $0x100] sm:$0xff]  }
 0x116   :  { %v232_v37 = vpop.f32.mrf.mxu1  ;;  %3405 = vmatpush3.bf16.msra.mxu1 %v3820_v33  ;;  %v3845_v33 = vld [vmem:[#allocation7 + $0x108] sm:$0xff]  }
 0x117   :  { %v236_v38 = vpack.c.bf16 %v235_v36, %v235_v36  ;;  %3406 = vmatprep.subr.bf16.mxu1 %v4113_v0  ;;  %v3848_v36 = vld [vmem:[#allocation7 + $0x150] sm:$0xff]   ;;  %v3849_v37 = vld [vmem:[#allocation7 + $0x148] sm:$0xff]  }
 0x118   :  { %v3353_v39 = vpop.f32.mrf.mxu1 }
 0x119   :  { %3371 = vmatmul.mubr.bf16.vlgmr.msra.gmra.mxu0 %v236_v38  ;;  %v3850_v38 = vld [vmem:[#allocation7 + $0x140] sm:$0xff]  }
 0x11a   :  { %3395 = vmatpush3.bf16.msra.mxu0 %v4197_v1  ;;  %3398 = vmatprep.mubr.msk.bf16.mxu0 %vm4114_vm0, %v4113_v0 }
 0x11b   :  { %3396 = vmatprep.subr.bf16.mxu0 %v4113_v0  ;;  %3407 = vmatpush3.bf16.msra.mxu1 %v3821_v44 }
 0x11c   :  { %3408 = vmatprep.subr.bf16.mxu1 %v4113_v0 }
 0x11e   :  { %3397 = vmatpush3.bf16.msra.mxu0 %v4200_v2 }
 0x11f   :  { %3422 = vmatprep.subr.bf16.mxu0 %v4113_v0  ;;  %3409 = vmatpush3.bf16.msra.mxu1 %v3823_v46 }
 0x120   :  { %3410 = vmatprep.subr.bf16.mxu1 %v4113_v0 }
 0x121   :  { %3399 = vmatmul.mubr.msk.bf16.vlgmr.msra.gmra.mxu0 %vm127_vm1, %v432_v41 }
 0x122   :  { %3423 = vmatpush3.bf16.msra.mxu0 %v4197_v1  ;;  %3426 = vmatprep.mubr.msk.bf16.mxu0 %vm4114_vm0, %v4113_v0 }
 0x123   :  { %3424 = vmatprep.subr.bf16.mxu0 %v4113_v0  ;;  %3411 = vmatpush3.bf16.msra.mxu1 %v3825_v48 }
 0x124   :  { %3412 = vmatprep.subr.bf16.mxu1 %v4113_v0 }
 0x126   :  { %3425 = vmatpush3.bf16.msra.mxu0 %v4200_v2 }
 0x127   :  { %3430 = vmatprep.subr.bf16.mxu0 %v4113_v0  ;;  %3413 = vmatpush3.bf16.msra.mxu1 %v3827_v50 }
 0x128   :  { %3414 = vmatprep.subr.bf16.mxu1 %v4113_v0 }
 0x129   :  { %3427 = vmatmul.mubr.msk.bf16.vlgmr.msra.gmra.mxu0 %vm127_vm1, %v586_v43 }
 0x12a   :  { %3446 = vmatprep.mubr.msk.bf16.mxu0 %vm4114_vm0, %v4113_v0  ;;  %3431 = vmatpush3.bf16.msra.mxu0 %v3822_v45 }
 0x12b   :  { %3432 = vmatprep.subr.bf16.mxu0 %v4113_v0  ;;  %3415 = vmatpush3.bf16.msra.mxu1 %v3829_v52 }
 0x12c   :  { %3416 = vmatprep.subr.bf16.mxu1 %v4113_v0 }
 0x12e   :  { %3433 = vmatpush3.bf16.msra.mxu0 %v3824_v47 }
 0x12f   :  { %3434 = vmatprep.subr.bf16.mxu0 %v4113_v0  ;;  %3417 = vmatpush3.bf16.msra.mxu1 %v3831_v54 }
 0x130   :  { %3450 = vmatprep.subr.bf16.mxu1 %v4113_v0 }
 0x132   :  { %3435 = vmatpush3.bf16.msra.mxu0 %v3826_v49 }
 0x133   :  { %3436 = vmatprep.subr.bf16.mxu0 %v4113_v0 }
 0x136   :  { %3437 = vmatpush3.bf16.msra.mxu0 %v3828_v51 }
 0x137   :  { %3438 = vmatprep.subr.bf16.mxu0 %v4113_v0 }
 0x13a   :  { %3439 = vmatpush3.bf16.msra.mxu0 %v3830_v53 }
 0x13b   :  { %3440 = vmatprep.subr.bf16.mxu0 %v4113_v0 }
 0x13e   :  { %3441 = vmatpush3.bf16.msra.mxu0 %v3832_v55 }
 0x13f   :  { %3442 = vmatprep.subr.bf16.mxu0 %v4113_v0 }
 0x142   :  { %3443 = vmatpush3.bf16.msra.mxu0 %v3833_v56 }
 0x143   :  { %3444 = vmatprep.subr.bf16.mxu0 %v4113_v0 }
 0x146   :  { %3445 = vmatpush3.bf16.msra.mxu0 %v3834_v57  ;;  %v4314_v57 = vld [vmem:[#allocation5 + $0x8] sm:$0xff]  }
 0x147   :  { %3478 = vmatprep.subr.bf16.mxu0 %v4113_v0 }
 0x1d1   :  { %v424_v58 = vpop.f32.mrf.mxu1 }
 0x1d3   :  { %v3392_v59 = vpop.f32.mrf.mxu1 }
 0x1d5   :  { %v427_v60 = vpop.f32.mrf.mxu1 }
 0x1d7   :  { %v3393_v61 = vpop.f32.mrf.mxu1 }
 0x1d9   :  { %v336_v62 = vpop.f32.mrf.mxu0 }
 0x1da   :  { %v4272_v63 = vadd.f32 %v424_v58, %v336_v62  ;;  %v1047_v58 = vld [vmem:[#allocation2 + $0xc] sm:$0x3] }
 0x1db   :  { %v3372_v3 = vpop.f32.mrf.mxu0  ;;  %v1048_v62 = vpack.c.bf16 %v1047_v58, %v1047_v58  ;;  %v3873_v58 = vld [vmem:[#allocation7 + $0x218] sm:$0xff]  }
 0x1dc   :  { %v4321_v3 = vld [vmem:[#allocation5] sm:$0xff]  }
 0x1dd   :  { %v339_v4 = vpop.f32.mrf.mxu0 }
 0x1df   :  { %v3373_v5 = vpop.f32.mrf.mxu0 }
 0x1e0   :  { %v3851_v5 = vld [vmem:[#allocation7 + $0x1b8] sm:$0xff]  }
 0x1e1   :  { %v470_v6 = vpop.f32.mrf.mxu0 }
 0x1e2   :  { %v471_v7 = vadd.f32 %v4234_v23, %v470_v6 }
 0x1e3   :  { %v3400_v8 = vpop.f32.mrf.mxu0 }
 0x1e4   :  { %v476_v9 = vmax.f32 %v471_v7, 0.0  ;;  %v1201_v7 = vld [vmem:[#allocation2 + $0xe] sm:$0x3]  ;;  %v3852_v8 = vld [vmem:[#allocation7 + $0x1b0] sm:$0xff]  }
 0x1e5   :  { %v473_v10 = vpop.f32.mrf.mxu0 }
 0x1e6   :  { %v477_v11 = vpack.c.bf16 %v476_v9, %v476_v9  ;;  %v1202_v9 = vpack.c.bf16 %v1201_v7, %v1201_v7  ;;  %v3854_v10 = vld [vmem:[#allocation7 + $0x1f8] sm:$0xff]   ;;  %v3882_v7 = vld [vmem:[#allocation7 + $0x240] sm:$0xff]  }
 0x1e7   :  { %v3401_v12 = vpop.f32.mrf.mxu0 }
 0x1e8   :  { %3419 = vmatmul.mubr.bf16.vlgmr.msra.gmra.mxu1 %v477_v11  ;;  %v3853_v11 = vld [vmem:[#allocation7 + $0x1a8] sm:$0xff]   ;;  %v3856_v12 = vld [vmem:[#allocation7 + $0x1f0] sm:$0xff]  }
 0x1e9   :  { %v624_v13 = vpop.f32.mrf.mxu0  ;;  %3451 = vmatpush3.bf16.msra.mxu1 %v4197_v1  ;;  %3454 = vmatprep.mubr.msk.bf16.mxu1 %vm4114_vm0, %v4113_v0 }
 0x1ea   :  { %v625_v15 = vadd.f32 %v4234_v23, %v624_v13  ;;  %3452 = vmatprep.subr.bf16.mxu1 %v4113_v0  ;;  %v3855_v13 = vld [vmem:[#allocation7 + $0x1a0] sm:$0xff]  }
 0x1eb   :  { %v3428_v16 = vpop.f32.mrf.mxu0 }
 0x1ec   :  { %v630_v17 = vmax.f32 %v625_v15, 0.0  ;;  %v3858_v15 = vld [vmem:[#allocation7 + $0x1e8] sm:$0xff]   ;;  %v3859_v16 = vld [vmem:[#allocation7 + $0x190] sm:$0xff]  }
 0x1ed   :  { %v627_v19 = vpop.f32.mrf.mxu0  ;;  %3453 = vmatpush3.bf16.msra.mxu1 %v4200_v2 }
 0x1ee   :  { %v631_v20 = vpack.c.bf16 %v630_v17, %v630_v17  ;;  %3458 = vmatprep.subr.bf16.mxu1 %v4113_v0  ;;  %v3860_v17 = vld [vmem:[#allocation7 + $0x1e0] sm:$0xff]   ;;  %v3862_v19 = vld [vmem:[#allocation7 + $0x1d8] sm:$0xff]  }
 0x1ef   :  { %v3429_v22 = vpop.f32.mrf.mxu0 }
 0x1f0   :  { %3447 = vmatmul.mubr.bf16.vlgmr.msra.gmra.mxu0 %v631_v20  ;;  %3455 = vmatmul.mubr.msk.bf16.vlgmr.msra.gmra.mxu1 %vm127_vm1, %v740_v18  ;;  %v3861_v18 = vld [vmem:[#allocation7 + $0x188] sm:$0xff]   ;;  %v3863_v20 = vld [vmem:[#allocation7 + $0x180] sm:$0xff]  }
 0x1f1   :  { %3479 = vmatpush3.bf16.msra.mxu0 %v4197_v1  ;;  %3482 = vmatprep.mubr.msk.bf16.mxu0 %vm4114_vm0, %v4113_v0  ;;  %v3837_v1 = vld [vmem:[#allocation7 + $0x128] sm:$0xff]  }
 0x1f2   :  { %3480 = vmatprep.subr.bf16.mxu0 %v4113_v0  ;;  %3459 = vmatpush3.bf16.msra.mxu1 %v3835_v21  ;;  %v3864_v21 = vld [vmem:[#allocation7 + $0x1d0] sm:$0xff]   ;;  %v3865_v22 = vld [vmem:[#allocation7 + $0x1c8] sm:$0xff]  }
 0x1f3   :  { %3460 = vmatprep.subr.bf16.mxu1 %v4113_v0  ;;  %3474 = vmatprep.mubr.msk.bf16.mxu1 %vm4114_vm0, %v4113_v0 }
 0x1f5   :  { %3481 = vmatpush3.bf16.msra.mxu0 %v4200_v2  ;;  %v3841_v2 = vld [vmem:[#allocation7 + $0x118] sm:$0xff]  }
 0x1f6   :  { %3461 = vmatpush3.bf16.msra.mxu1 %v3836_v25  ;;  %3486 = vmatprep.subr.bf16.mxu0 %v4113_v0 }
 0x1f7   :  { %3462 = vmatprep.subr.bf16.mxu1 %v4113_v0 }
 0x1f8   :  { %3483 = vmatmul.mubr.msk.bf16.vlgmr.msra.gmra.mxu0 %vm127_vm1, %v894_v26 }
 0x1f9   :  { %3487 = vmatpush3.bf16.msra.mxu0 %v3838_v27  ;;  %3502 = vmatprep.mubr.msk.bf16.mxu0 %vm4114_vm0, %v4113_v0 }
 0x1fa   :  { %3463 = vmatpush3.bf16.msra.mxu1 %v3837_v1  ;;  %3488 = vmatprep.subr.bf16.mxu0 %v4113_v0 }
 0x1fb   :  { %3464 = vmatprep.subr.bf16.mxu1 %v4113_v0 }
 0x1fd   :  { %3489 = vmatpush3.bf16.msra.mxu0 %v3840_v28 }
 0x1fe   :  { %3465 = vmatpush3.bf16.msra.mxu1 %v3839_v29  ;;  %3490 = vmatprep.subr.bf16.mxu0 %v4113_v0 }
 0x1ff   :  { %3466 = vmatprep.subr.bf16.mxu1 %v4113_v0 }
 0x201   :  { %3491 = vmatpush3.bf16.msra.mxu0 %v3842_v30 }
 0x202   :  { %3467 = vmatpush3.bf16.msra.mxu1 %v3841_v2  ;;  %3492 = vmatprep.subr.bf16.mxu0 %v4113_v0 }
 0x203   :  { %3468 = vmatprep.subr.bf16.mxu1 %v4113_v0 }
 0x205   :  { %3493 = vmatpush3.bf16.msra.mxu0 %v3844_v32 }
 0x206   :  { %3469 = vmatpush3.bf16.msra.mxu1 %v3843_v31  ;;  %3494 = vmatprep.subr.bf16.mxu0 %v4113_v0 }
 0x207   :  { %3470 = vmatprep.subr.bf16.mxu1 %v4113_v0 }
 0x209   :  { %3495 = vmatpush3.bf16.msra.mxu0 %v3846_v34 }
 0x20a   :  { %3471 = vmatpush3.bf16.msra.mxu1 %v3845_v33  ;;  %3496 = vmatprep.subr.bf16.mxu0 %v4113_v0 }
 0x20b   :  { %3472 = vmatprep.subr.bf16.mxu1 %v4113_v0 }
 0x20d   :  { %3497 = vmatpush3.bf16.msra.mxu0 %v3848_v36 }
 0x20e   :  { %3473 = vmatpush3.bf16.msra.mxu1 %v3847_v35  ;;  %3498 = vmatprep.subr.bf16.mxu0 %v4113_v0 }
 0x20f   :  { %3506 = vmatprep.subr.bf16.mxu1 %v4113_v0 }
 0x211   :  { %3499 = vmatpush3.bf16.msra.mxu0 %v3849_v37 }
 0x212   :  { %3500 = vmatprep.subr.bf16.mxu0 %v4113_v0 }
 0x215   :  { %3501 = vmatpush3.bf16.msra.mxu0 %v3850_v38 }
 0x216   :  { %3534 = vmatprep.subr.bf16.mxu0 %v4113_v0 }
 0x2a8   :  { %v577_v39 = vpop.f32.mrf.mxu1 }
 0x2a9   :  { %v583_v40 = vadd.f32 %v577_v39, %v4272_v63 }
 0x2aa   :  { %v3420_v41 = vpop.f32.mrf.mxu1 }
 0x2ab   :  { %v1355_v41 = vld [vmem:[#allocation2 + $0x10] sm:$0x3] }
 0x2ac   :  { %v580_v42 = vpop.f32.mrf.mxu1 }
 0x2ae   :  { %v3421_v43 = vpop.f32.mrf.mxu1 }
 0x2b0   :  { %v731_v44 = vpop.f32.mrf.mxu0  ;;  %v778_v45 = vpop.f32.mrf.mxu1 }
 0x2b1   :  { %v4311_v46 = vadd.f32 %v731_v44, %v583_v40  ;;  %v779_v47 = vadd.f32 %v4234_v23, %v778_v45  ;;  %v1356_v45 = vpack.c.bf16 %v1355_v41, %v1355_v41  ;;  %v3889_v41 = vld [vmem:[#allocation7 + $0x298] sm:$0xff]  }
 0x2b2   :  { %v3448_v48 = vpop.f32.mrf.mxu0  ;;  %v3456_v49 = vpop.f32.mrf.mxu1 }
 0x2b3   :  { %v784_v50 = vmax.f32 %v779_v47, 0.0  ;;  %v3867_v48 = vld [vmem:[#allocation7 + $0x238] sm:$0xff]  }
 0x2b4   :  { %v734_v51 = vpop.f32.mrf.mxu0  ;;  %v781_v52 = vpop.f32.mrf.mxu1 }
 0x2b5   :  { %v785_v53 = vpack.c.bf16 %v784_v50, %v784_v50  ;;  %v1509_v50 = vld [vmem:[#allocation2 + $0x12] sm:$0x3]  ;;  %v3868_v51 = vld [vmem:[#allocation7 + $0x230] sm:$0xff]  }
 0x2b6   :  { %v3449_v54 = vpop.f32.mrf.mxu0  ;;  %v3457_v55 = vpop.f32.mrf.mxu1  ;;  %v1510_v52 = vpack.c.bf16 %v1509_v50, %v1509_v50  ;;  %v3898_v50 = vld [vmem:[#allocation7 + $0x2c0] sm:$0xff]  }
 0x2b7   :  { %3475 = vmatmul.mubr.bf16.vlgmr.msra.gmra.mxu1 %v785_v53  ;;  %v3870_v53 = vld [vmem:[#allocation7 + $0x278] sm:$0xff]   ;;  %v3869_v54 = vld [vmem:[#allocation7 + $0x228] sm:$0xff]   ;;  %v3872_v55 = vld [vmem:[#allocation7 + $0x270] sm:$0xff]  }
 0x2b8   :  { %v932_v56 = vpop.f32.mrf.mxu0  ;;  %3507 = vmatpush3.bf16.msra.mxu1 %v4314_v57  ;;  %3510 = vmatprep.mubr.msk.bf16.mxu1 %vm4114_vm0, %v4113_v0 }
 0x2b9   :  { %v933_v59 = vadd.f32 %v4234_v23, %v932_v56  ;;  %3508 = vmatprep.subr.bf16.mxu1 %v4113_v0  ;;  %v3871_v56 = vld [vmem:[#allocation7 + $0x220] sm:$0xff]  }
 0x2ba   :  { %v3484_v60 = vpop.f32.mrf.mxu0 }
 0x2bb   :  { %v938_v61 = vmax.f32 %v933_v59, 0.0  ;;  %v3874_v59 = vld [vmem:[#allocation7 + $0x268] sm:$0xff]   ;;  %v3875_v60 = vld [vmem:[#allocation7 + $0x210] sm:$0xff]  }
 0x2bc   :  { %v935_v63 = vpop.f32.mrf.mxu0  ;;  %3509 = vmatpush3.bf16.msra.mxu1 %v4321_v3 }
 0x2bd   :  { %v939_v4 = vpack.c.bf16 %v938_v61, %v938_v61  ;;  %3514 = vmatprep.subr.bf16.mxu1 %v4113_v0  ;;  %v3876_v61 = vld [vmem:[#allocation7 + $0x260] sm:$0xff]   ;;  %v3878_v63 = vld [vmem:[#allocation7 + $0x258] sm:$0xff]  }
 0x2be   :  { %v3485_v6 = vpop.f32.mrf.mxu0 }
 0x2bf   :  { %3503 = vmatmul.mubr.bf16.vlgmr.msra.gmra.mxu0 %v939_v4  ;;  %3511 = vmatmul.mubr.msk.bf16.vlgmr.msra.gmra.mxu1 %vm127_vm1, %v1048_v62  ;;  %v3877_v62 = vld [vmem:[#allocation7 + $0x208] sm:$0xff]   ;;  %v3879_v4 = vld [vmem:[#allocation7 + $0x200] sm:$0xff]  }
 0x2c0   :  { %3535 = vmatpush3.bf16.msra.mxu0 %v4314_v57  ;;  %3538 = vmatprep.mubr.msk.bf16.mxu0 %vm4114_vm0, %v4113_v0  ;;  %v3881_v6 = vld [vmem:[#allocation7 + $0x248] sm:$0xff]  }
 0x2c1   :  { %3536 = vmatprep.subr.bf16.mxu0 %v4113_v0  ;;  %3515 = vmatpush3.bf16.msra.mxu1 %v3851_v5  ;;  %v3880_v5 = vld [vmem:[#allocation7 + $0x250] sm:$0xff]  }
 0x2c2   :  { %3516 = vmatprep.subr.bf16.mxu1 %v4113_v0  ;;  %3530 = vmatprep.mubr.msk.bf16.mxu1 %vm4114_vm0, %v4113_v0 }
 0x2c4   :  { %3537 = vmatpush3.bf16.msra.mxu0 %v4321_v3 }
 0x2c5   :  { %3517 = vmatpush3.bf16.msra.mxu1 %v3852_v8  ;;  %3542 = vmatprep.subr.bf16.mxu0 %v4113_v0 }
 0x2c6   :  { %3518 = vmatprep.subr.bf16.mxu1 %v4113_v0 }
 0x2c7   :  { %3539 = vmatmul.mubr.msk.bf16.vlgmr.msra.gmra.mxu0 %vm127_vm1, %v1202_v9 }
 0x2c8   :  { %3543 = vmatpush3.bf16.msra.mxu0 %v3854_v10  ;;  %3558 = vmatprep.mubr.msk.bf16.mxu0 %vm4114_vm0, %v4113_v0 }
 0x2c9   :  { %3519 = vmatpush3.bf16.msra.mxu1 %v3853_v11  ;;  %3544 = vmatprep.subr.bf16.mxu0 %v4113_v0 }
 0x2ca   :  { %3520 = vmatprep.subr.bf16.mxu1 %v4113_v0 }
 0x2cc   :  { %3545 = vmatpush3.bf16.msra.mxu0 %v3856_v12 }
 0x2cd   :  { %3521 = vmatpush3.bf16.msra.mxu1 %v3855_v13  ;;  %3546 = vmatprep.subr.bf16.mxu0 %v4113_v0 }
 0x2ce   :  { %3522 = vmatprep.subr.bf16.mxu1 %v4113_v0 }
 0x2d0   :  { %3547 = vmatpush3.bf16.msra.mxu0 %v3858_v15 }
 0x2d1   :  { %3523 = vmatpush3.bf16.msra.mxu1 %v3857_v14  ;;  %3548 = vmatprep.subr.bf16.mxu0 %v4113_v0 }
 0x2d2   :  { %3524 = vmatprep.subr.bf16.mxu1 %v4113_v0 }
 0x2d4   :  { %3549 = vmatpush3.bf16.msra.mxu0 %v3860_v17 }
 0x2d5   :  { %3525 = vmatpush3.bf16.msra.mxu1 %v3859_v16  ;;  %3550 = vmatprep.subr.bf16.mxu0 %v4113_v0 }
 0x2d6   :  { %3526 = vmatprep.subr.bf16.mxu1 %v4113_v0 }
 0x2d8   :  { %3551 = vmatpush3.bf16.msra.mxu0 %v3862_v19 }
 0x2d9   :  { %3527 = vmatpush3.bf16.msra.mxu1 %v3861_v18  ;;  %3552 = vmatprep.subr.bf16.mxu0 %v4113_v0 }
 0x2da   :  { %3528 = vmatprep.subr.bf16.mxu1 %v4113_v0 }
 0x2dc   :  { %3553 = vmatpush3.bf16.msra.mxu0 %v3864_v21 }
 0x2dd   :  { %3529 = vmatpush3.bf16.msra.mxu1 %v3863_v20  ;;  %3554 = vmatprep.subr.bf16.mxu0 %v4113_v0 }
 0x2de   :  { %3562 = vmatprep.subr.bf16.mxu1 %v4113_v0 }
 0x2e0   :  { %3555 = vmatpush3.bf16.msra.mxu0 %v3865_v22 }
 0x2e1   :  { %3556 = vmatprep.subr.bf16.mxu0 %v4113_v0 }
 0x2e4   :  { %3557 = vmatpush3.bf16.msra.mxu0 %v3866_v24 }
 0x2e5   :  { %3590 = vmatprep.subr.bf16.mxu0 %v4113_v0 }
 0x377   :  { %v885_v25 = vpop.f32.mrf.mxu1 }
 0x378   :  { %v891_v26 = vadd.f32 %v885_v25, %v4311_v46 }
 0x379   :  { %v3476_v27 = vpop.f32.mrf.mxu1 }
 0x37a   :  { %v1663_v27 = vld [vmem:[#allocation2 + $0x14] sm:$0x3] }
 0x37b   :  { %v888_v1 = vpop.f32.mrf.mxu1 }
 0x37d   :  { %v3477_v28 = vpop.f32.mrf.mxu1 }
 0x37f   :  { %v1039_v29 = vpop.f32.mrf.mxu0  ;;  %v1086_v2 = vpop.f32.mrf.mxu1 }
 0x380   :  { %v4354_v30 = vadd.f32 %v1039_v29, %v891_v26  ;;  %v1087_v31 = vadd.f32 %v4234_v23, %v1086_v2  ;;  %v1664_v2 = vpack.c.bf16 %v1663_v27, %v1663_v27  ;;  %v3906_v27 = vld [vmem:[#allocation7 + $0x368] sm:$0xff]  }
 0x381   :  { %v3504_v32 = vpop.f32.mrf.mxu0  ;;  %v3512_v33 = vpop.f32.mrf.mxu1 }
 0x382   :  { %v1092_v34 = vmax.f32 %v1087_v31, 0.0  ;;  %v3883_v32 = vld [vmem:[#allocation7 + $0x2b8] sm:$0xff]  }
 0x383   :  { %v1042_v35 = vpop.f32.mrf.mxu0  ;;  %v1089_v36 = vpop.f32.mrf.mxu1 }
 0x384   :  { %v1093_v37 = vpack.c.bf16 %v1092_v34, %v1092_v34  ;;  %v1817_v34 = vld [vmem:[#allocation2 + $0x16] sm:$0x3]  ;;  %v3884_v35 = vld [vmem:[#allocation7 + $0x2b0] sm:$0xff]  }
 0x385   :  { %v3505_v38 = vpop.f32.mrf.mxu0  ;;  %v3513_v39 = vpop.f32.mrf.mxu1  ;;  %v1818_v36 = vpack.c.bf16 %v1817_v34, %v1817_v34 }
 0x386   :  { %3531 = vmatmul.mubr.bf16.vlgmr.msra.gmra.mxu1 %v1093_v37  ;;  %v3886_v37 = vld [vmem:[#allocation7 + $0x2f8] sm:$0xff]   ;;  %v3885_v38 = vld [vmem:[#allocation7 + $0x2a8] sm:$0xff]   ;;  %v3888_v39 = vld [vmem:[#allocation7 + $0x2f0] sm:$0xff]  }
 0x387   :  { %v1240_v40 = vpop.f32.mrf.mxu0  ;;  %3563 = vmatpush3.bf16.msra.mxu1 %v4314_v57  ;;  %3566 = vmatprep.mubr.msk.bf16.mxu1 %vm4114_vm0, %v4113_v0 }
 0x388   :  { %v1241_v42 = vadd.f32 %v4234_v23, %v1240_v40  ;;  %3564 = vmatprep.subr.bf16.mxu1 %v4113_v0  ;;  %v3887_v40 = vld [vmem:[#allocation7 + $0x2a0] sm:$0xff]  }
 0x389   :  { %v3540_v43 = vpop.f32.mrf.mxu0 }
 0x38a   :  { %v1246_v44 = vmax.f32 %v1241_v42, 0.0  ;;  %v3890_v42 = vld [vmem:[#allocation7 + $0x2e8] sm:$0xff]   ;;  %v3891_v43 = vld [vmem:[#allocation7 + $0x290] sm:$0xff]  }
 0x38b   :  { %v1243_v46 = vpop.f32.mrf.mxu0  ;;  %3565 = vmatpush3.bf16.msra.mxu1 %v4321_v3 }
 0x38c   :  { %v1247_v47 = vpack.c.bf16 %v1246_v44, %v1246_v44  ;;  %3570 = vmatprep.subr.bf16.mxu1 %v4113_v0  ;;  %v3892_v44 = vld [vmem:[#allocation7 + $0x2e0] sm:$0xff]   ;;  %v3894_v46 = vld [vmem:[#allocation7 + $0x2d8] sm:$0xff]  }
 0x38d   :  { %v3541_v49 = vpop.f32.mrf.mxu0 }
 0x38e   :  { %3559 = vmatmul.mubr.bf16.vlgmr.msra.gmra.mxu0 %v1247_v47  ;;  %3567 = vmatmul.mubr.msk.bf16.vlgmr.msra.gmra.mxu1 %vm127_vm1, %v1356_v45  ;;  %v3893_v45 = vld [vmem:[#allocation7 + $0x288] sm:$0xff]   ;;  %v3895_v47 = vld [vmem:[#allocation7 + $0x280] sm:$0xff]  }
 0x38f   :  { %3591 = vmatpush3.bf16.msra.mxu0 %v4314_v57  ;;  %3594 = vmatprep.mubr.msk.bf16.mxu0 %vm4114_vm0, %v4113_v0  ;;  %v3897_v49 = vld [vmem:[#allocation7 + $0x2c8] sm:$0xff]  }
 0x390   :  { %3592 = vmatprep.subr.bf16.mxu0 %v4113_v0  ;;  %3571 = vmatpush3.bf16.msra.mxu1 %v3867_v48  ;;  %v3896_v48 = vld [vmem:[#allocation7 + $0x2d0] sm:$0xff]  }
 0x391   :  { %3572 = vmatprep.subr.bf16.mxu1 %v4113_v0  ;;  %3586 = vmatprep.mubr.msk.bf16.mxu1 %vm4114_vm0, %v4113_v0 }
 0x393   :  { %3593 = vmatpush3.bf16.msra.mxu0 %v4321_v3 }
 0x394   :  { %3573 = vmatpush3.bf16.msra.mxu1 %v3868_v51  ;;  %3598 = vmatprep.subr.bf16.mxu0 %v4113_v0 }
 0x395   :  { %3574 = vmatprep.subr.bf16.mxu1 %v4113_v0 }
 0x396   :  { %3595 = vmatmul.mubr.msk.bf16.vlgmr.msra.gmra.mxu0 %vm127_vm1, %v1510_v52 }
 0x397   :  { %3599 = vmatpush3.bf16.msra.mxu0 %v3870_v53  ;;  %3614 = vmatprep.mubr.msk.bf16.mxu0 %vm4114_vm0, %v4113_v0 }
 0x398   :  { %3575 = vmatpush3.bf16.msra.mxu1 %v3869_v54  ;;  %3600 = vmatprep.subr.bf16.mxu0 %v4113_v0 }
 0x399   :  { %3576 = vmatprep.subr.bf16.mxu1 %v4113_v0 }
 0x39b   :  { %3601 = vmatpush3.bf16.msra.mxu0 %v3872_v55 }
 0x39c   :  { %3577 = vmatpush3.bf16.msra.mxu1 %v3871_v56  ;;  %3602 = vmatprep.subr.bf16.mxu0 %v4113_v0 }
 0x39d   :  { %3578 = vmatprep.subr.bf16.mxu1 %v4113_v0 }
 0x39f   :  { %3603 = vmatpush3.bf16.msra.mxu0 %v3874_v59 }
 0x3a0   :  { %3579 = vmatpush3.bf16.msra.mxu1 %v3873_v58  ;;  %3604 = vmatprep.subr.bf16.mxu0 %v4113_v0 }
 0x3a1   :  { %3580 = vmatprep.subr.bf16.mxu1 %v4113_v0 }
 0x3a3   :  { %3605 = vmatpush3.bf16.msra.mxu0 %v3876_v61 }
 0x3a4   :  { %3581 = vmatpush3.bf16.msra.mxu1 %v3875_v60  ;;  %3606 = vmatprep.subr.bf16.mxu0 %v4113_v0 }
 0x3a5   :  { %3582 = vmatprep.subr.bf16.mxu1 %v4113_v0 }
 0x3a7   :  { %3607 = vmatpush3.bf16.msra.mxu0 %v3878_v63 }
 0x3a8   :  { %3583 = vmatpush3.bf16.msra.mxu1 %v3877_v62  ;;  %3608 = vmatprep.subr.bf16.mxu0 %v4113_v0 }
 0x3a9   :  { %3584 = vmatprep.subr.bf16.mxu1 %v4113_v0 }
 0x3ab   :  { %3609 = vmatpush3.bf16.msra.mxu0 %v3880_v5 }
 0x3ac   :  { %3585 = vmatpush3.bf16.msra.mxu1 %v3879_v4  ;;  %3610 = vmatprep.subr.bf16.mxu0 %v4113_v0 }
 0x3ad   :  { %3618 = vmatprep.subr.bf16.mxu1 %v4113_v0 }
 0x3af   :  { %3611 = vmatpush3.bf16.msra.mxu0 %v3881_v6 }
 0x3b0   :  { %3612 = vmatprep.subr.bf16.mxu0 %v4113_v0 }
 0x3b3   :  { %3613 = vmatpush3.bf16.msra.mxu0 %v3882_v7 }
 0x3b4   :  { %3646 = vmatprep.subr.bf16.mxu0 %v4113_v0 }
 0x446   :  { %v1193_v8 = vpop.f32.mrf.mxu1 }
 0x447   :  { %v1199_v9 = vadd.f32 %v1193_v8, %v4354_v30 }
 0x448   :  { %v3532_v10 = vpop.f32.mrf.mxu1 }
 0x449   :  { %v1971_v10 = vld [vmem:[#allocation2 + $0x18] sm:$0x3] }
 0x44a   :  { %v1196_v11 = vpop.f32.mrf.mxu1 }
 0x44c   :  { %v3533_v12 = vpop.f32.mrf.mxu1 }
 0x44e   :  { %v1347_v13 = vpop.f32.mrf.mxu0  ;;  %v1394_v14 = vpop.f32.mrf.mxu1 }
 0x44f   :  { %v4393_v15 = vadd.f32 %v1347_v13, %v1199_v9  ;;  %v1395_v16 = vadd.f32 %v4234_v23, %v1394_v14  ;;  %v1972_v14 = vpack.c.bf16 %v1971_v10, %v1971_v10  ;;  %v3923_v10 = vld [vmem:[#allocation7 + $0x390] sm:$0xff]  }
 0x450   :  { %v3560_v17 = vpop.f32.mrf.mxu0  ;;  %v3568_v18 = vpop.f32.mrf.mxu1 }
 0x451   :  { %v1400_v19 = vmax.f32 %v1395_v16, 0.0  ;;  %v3899_v17 = vld [vmem:[#allocation7 + $0x338] sm:$0xff]  }
 0x452   :  { %v1350_v20 = vpop.f32.mrf.mxu0  ;;  %v1397_v21 = vpop.f32.mrf.mxu1 }
 0x453   :  { %v1401_v22 = vpack.c.bf16 %v1400_v19, %v1400_v19  ;;  %v3900_v19 = vld [vmem:[#allocation7 + $0x330] sm:$0xff]   ;;  %v3902_v21 = vld [vmem:[#allocation7 + $0x378] sm:$0xff]  }
 0x454   :  { %v3561_v24 = vpop.f32.mrf.mxu0  ;;  %v3569_v25 = vpop.f32.mrf.mxu1 }
 0x455   :  { %3587 = vmatmul.mubr.bf16.vlgmr.msra.gmra.mxu1 %v1401_v22  ;;  %v3901_v22 = vld [vmem:[#allocation7 + $0x328] sm:$0xff]   ;;  %v3904_v24 = vld [vmem:[#allocation7 + $0x370] sm:$0xff]   ;;  %v3903_v25 = vld [vmem:[#allocation7 + $0x320] sm:$0xff]  }
 0x456   :  { %v1548_v26 = vpop.f32.mrf.mxu0  ;;  %3619 = vmatpush3.bf16.msra.mxu1 %v4314_v57  ;;  %3622 = vmatprep.mubr.msk.bf16.mxu1 %vm4114_vm0, %v4113_v0 }
 0x457   :  { %v1549_v1 = vadd.f32 %v4234_v23, %v1548_v26  ;;  %3620 = vmatprep.subr.bf16.mxu1 %v4113_v0  ;;  %v3905_v26 = vld [vmem:[#allocation7 + $0x318] sm:$0xff]  }
 0x458   :  { %v3596_v28 = vpop.f32.mrf.mxu0 }
 0x459   :  { %v1554_v29 = vmax.f32 %v1549_v1, 0.0  ;;  %v3907_v1 = vld [vmem:[#allocation7 + $0x310] sm:$0xff]   ;;  %v3908_v28 = vld [vmem:[#allocation7 + $0x360] sm:$0xff]  }
 0x45a   :  { %v1551_v30 = vpop.f32.mrf.mxu0  ;;  %3621 = vmatpush3.bf16.msra.mxu1 %v4321_v3 }
 0x45b   :  { %v1555_v31 = vpack.c.bf16 %v1554_v29, %v1554_v29  ;;  %3626 = vmatprep.subr.bf16.mxu1 %v4113_v0  ;;  %v3909_v29 = vld [vmem:[#allocation7 + $0x308] sm:$0xff]   ;;  %v3911_v30 = vld [vmem:[#allocation7 + $0x300] sm:$0xff]  }
 0x45c   :  { %v3597_v33 = vpop.f32.mrf.mxu0 }
 0x45d   :  { %3615 = vmatmul.mubr.bf16.vlgmr.msra.gmra.mxu0 %v1555_v31  ;;  %3623 = vmatmul.mubr.msk.bf16.vlgmr.msra.gmra.mxu1 %vm127_vm1, %v1664_v2  ;;  %v3910_v2 = vld [vmem:[#allocation7 + $0x358] sm:$0xff]   ;;  %v3912_v31 = vld [vmem:[#allocation7 + $0x350] sm:$0xff]   ;;  %v3914_v33 = vld [vmem:[#allocation7 + $0x340] sm:$0xff]  }
 0x45e   :  { %3647 = vmatpush3.bf16.msra.mxu0 %v4314_v57  ;;  %3650 = vmatprep.mubr.msk.bf16.mxu0 %vm4114_vm0, %v4113_v0 }
 0x45f   :  { %3648 = vmatprep.subr.bf16.mxu0 %v4113_v0  ;;  %3627 = vmatpush3.bf16.msra.mxu1 %v3883_v32  ;;  %v3913_v32 = vld [vmem:[#allocation7 + $0x348] sm:$0xff]  }
 0x460   :  { %3628 = vmatprep.subr.bf16.mxu1 %v4113_v0  ;;  %3642 = vmatprep.mubr.msk.bf16.mxu1 %vm4114_vm0, %v4113_v0 }
 0x462   :  { %3649 = vmatpush3.bf16.msra.mxu0 %v4321_v3 }
 0x463   :  { %3629 = vmatpush3.bf16.msra.mxu1 %v3884_v35  ;;  %3654 = vmatprep.subr.bf16.mxu0 %v4113_v0 }
 0x464   :  { %3630 = vmatprep.subr.bf16.mxu1 %v4113_v0 }
 0x465   :  { %3651 = vmatmul.mubr.msk.bf16.vlgmr.msra.gmra.mxu0 %vm127_vm1, %v1818_v36 }
 0x466   :  { %3655 = vmatpush3.bf16.msra.mxu0 %v3886_v37  ;;  %3670 = vmatprep.mubr.msk.bf16.mxu0 %vm4114_vm0, %v4113_v0 }
 0x467   :  { %3631 = vmatpush3.bf16.msra.mxu1 %v3885_v38  ;;  %3656 = vmatprep.subr.bf16.mxu0 %v4113_v0 }
 0x468   :  { %3632 = vmatprep.subr.bf16.mxu1 %v4113_v0 }
 0x46a   :  { %3657 = vmatpush3.bf16.msra.mxu0 %v3888_v39 }
 0x46b   :  { %3633 = vmatpush3.bf16.msra.mxu1 %v3887_v40  ;;  %3658 = vmatprep.subr.bf16.mxu0 %v4113_v0 }
 0x46c   :  { %3634 = vmatprep.subr.bf16.mxu1 %v4113_v0 }
 0x46e   :  { %3659 = vmatpush3.bf16.msra.mxu0 %v3890_v42  ;;  %v4476_v42 = vld [vmem:[%s4532_s2] ss:$0 sm:$0xff] }
 0x46f   :  { %3635 = vmatpush3.bf16.msra.mxu1 %v3889_v41  ;;  %3660 = vmatprep.subr.bf16.mxu0 %v4113_v0 }
 0x470   :  { %3636 = vmatprep.subr.bf16.mxu1 %v4113_v0 }
 0x472   :  { %3661 = vmatpush3.bf16.msra.mxu0 %v3892_v44 }
 0x473   :  { %3637 = vmatpush3.bf16.msra.mxu1 %v3891_v43  ;;  %3662 = vmatprep.subr.bf16.mxu0 %v4113_v0 }
 0x474   :  { %3638 = vmatprep.subr.bf16.mxu1 %v4113_v0 }
 0x476   :  { %3663 = vmatpush3.bf16.msra.mxu0 %v3894_v46 }
 0x477   :  { %3639 = vmatpush3.bf16.msra.mxu1 %v3893_v45  ;;  %3664 = vmatprep.subr.bf16.mxu0 %v4113_v0 }
 0x478   :  { %3640 = vmatprep.subr.bf16.mxu1 %v4113_v0 }
 0x47a   :  { %3665 = vmatpush3.bf16.msra.mxu0 %v3896_v48 }
 0x47b   :  { %3641 = vmatpush3.bf16.msra.mxu1 %v3895_v47  ;;  %3666 = vmatprep.subr.bf16.mxu0 %v4113_v0 }
 0x47c   :  { %3674 = vmatprep.subr.bf16.mxu1 %v4113_v0 }
 0x47e   :  { %3667 = vmatpush3.bf16.msra.mxu0 %v3897_v49 }
 0x47f   :  { %3668 = vmatprep.subr.bf16.mxu0 %v4113_v0 }
 0x482   :  { %3669 = vmatpush3.bf16.msra.mxu0 %v3898_v50 }
 0x483   :  { %3702 = vmatprep.subr.bf16.mxu0 %v4113_v0 }
 0x515   :  { %v1501_v51 = vpop.f32.mrf.mxu1 }
 0x516   :  { %v1507_v52 = vadd.f32 %v1501_v51, %v4393_v15 }
 0x517   :  { %v3588_v53 = vpop.f32.mrf.mxu1 }
 0x518   :  { %v2279_v53 = vld [vmem:[#allocation2 + $0x1c] sm:$0x3] }
 0x519   :  { %v1504_v54 = vpop.f32.mrf.mxu1 }
 0x51b   :  { %v3589_v55 = vpop.f32.mrf.mxu1 }
 0x51d   :  { %v1655_v56 = vpop.f32.mrf.mxu0  ;;  %v1702_v58 = vpop.f32.mrf.mxu1 }
 0x51e   :  { %v4432_v59 = vadd.f32 %v1655_v56, %v1507_v52  ;;  %v1703_v60 = vadd.f32 %v4234_v23, %v1702_v58  ;;  %v2280_v58 = vpack.c.bf16 %v2279_v53, %v2279_v53  ;;  %v3954_v53 = vld [vmem:[#allocation8 + $0x4] ss:$8 sps:$4 sm:$0xff]  }
 0x51f   :  { %v3616_v61 = vpop.f32.mrf.mxu0  ;;  %v3624_v62 = vpop.f32.mrf.mxu1 }
 0x520   :  { %v1708_v63 = vmax.f32 %v1703_v60, 0.0  ;;  %v3915_v61 = vld [vmem:[#allocation7 + $0x3b8] sm:$0xff]  }
 0x521   :  { %v1658_v4 = vpop.f32.mrf.mxu0  ;;  %v1705_v5 = vpop.f32.mrf.mxu1 }
 0x522   :  { %v1709_v6 = vpack.c.bf16 %v1708_v63, %v1708_v63  ;;  %v2433_v63 = vld [vmem:[#allocation2 + $0x1e] sm:$0x3]  ;;  %v3916_v4 = vld [vmem:[#allocation7 + $0x3b0] sm:$0xff]  }
 0x523   :  { %v3617_v7 = vpop.f32.mrf.mxu0  ;;  %v3625_v8 = vpop.f32.mrf.mxu1  ;;  %v2434_v5 = vpack.c.bf16 %v2433_v63, %v2433_v63  ;;  %v3961_v63 = vld [vmem:[#allocation10 + $0x60] sm:$0xff]  }
 0x524   :  { %3643 = vmatmul.mubr.bf16.vlgmr.msra.gmra.mxu1 %v1709_v6  ;;  %v3918_v6 = vld [vmem:[#allocation7 + $0x3f8] sm:$0xff]   ;;  %v3920_v7 = vld [vmem:[#allocation7 + $0x3f0] sm:$0xff]   ;;  %v3919_v8 = vld [vmem:[#allocation7 + $0x3a0] sm:$0xff]  }
 0x525   :  { %v1856_v9 = vpop.f32.mrf.mxu0  ;;  %3675 = vmatpush3.bf16.msra.mxu1 %v4314_v57  ;;  %3678 = vmatprep.mubr.msk.bf16.mxu1 %vm4114_vm0, %v4113_v0 }
 0x526   :  { %v1857_v11 = vadd.f32 %v4234_v23, %v1856_v9  ;;  %3676 = vmatprep.subr.bf16.mxu1 %v4113_v0  ;;  %v2125_v23 = vld [vmem:[#allocation2 + $0x1a] sm:$0x3] }
 0x527   :  { %v3652_v12 = vpop.f32.mrf.mxu0  ;;  %v2126_v20 = vpack.c.bf16 %v2125_v23, %v2125_v23  ;;  %v3922_v9 = vld [vmem:[#allocation7 + $0x3e8] sm:$0xff]  }
 0x528   :  { %v1862_v13 = vmax.f32 %v1857_v11, 0.0  ;;  %v3924_v11 = vld [vmem:[#allocation7 + $0x3e0] sm:$0xff]   ;;  %v3925_v12 = vld [vmem:[#allocation7 + $0x388] sm:$0xff]  }
 0x529   :  { %v1859_v15 = vpop.f32.mrf.mxu0  ;;  %3677 = vmatpush3.bf16.msra.mxu1 %v4321_v3 }
 0x52a   :  { %v1863_v16 = vpack.c.bf16 %v1862_v13, %v1862_v13  ;;  %3682 = vmatprep.subr.bf16.mxu1 %v4113_v0  ;;  %v3926_v13 = vld [vmem:[#allocation7 + $0x3d8] sm:$0xff]   ;;  %v3928_v15 = vld [vmem:[#allocation7 + $0x3d0] sm:$0xff]  }
 0x52b   :  { %v3653_v18 = vpop.f32.mrf.mxu0 }
 0x52c   :  { %3671 = vmatmul.mubr.bf16.vlgmr.msra.gmra.mxu0 %v1863_v16  ;;  %3679 = vmatmul.mubr.msk.bf16.vlgmr.msra.gmra.mxu1 %vm127_vm1, %v1972_v14  ;;  %v3927_v14 = vld [vmem:[#allocation7 + $0x380] sm:$0xff]   ;;  %v3929_v16 = vld [vmem:[#allocation7 + $0x3c8] sm:$0xff]   ;;  %v3933_v18 = vld [vmem:[#allocation8 + $0x74] ss:$8 sps:$4 sm:$0xff]  }
 0x52d   :  { %3703 = vmatpush3.bf16.msra.mxu0 %v4314_v57  ;;  %3706 = vmatprep.mubr.msk.bf16.mxu0 %vm4114_vm0, %v4113_v0 }
 0x52e   :  { %3704 = vmatprep.subr.bf16.mxu0 %v4113_v0  ;;  %3683 = vmatpush3.bf16.msra.mxu1 %v3899_v17  ;;  %v3930_v17 = vld [vmem:[#allocation7 + $0x3c0] sm:$0xff]  }
 0x52f   :  { %3684 = vmatprep.subr.bf16.mxu1 %v4113_v0  ;;  %3698 = vmatprep.mubr.msk.bf16.mxu1 %vm4114_vm0, %v4113_v0 }
 0x531   :  { %3705 = vmatpush3.bf16.msra.mxu0 %v4321_v3 }
 0x532   :  { %3685 = vmatpush3.bf16.msra.mxu1 %v3900_v19  ;;  %3710 = vmatprep.subr.bf16.mxu0 %v4113_v0 }
 0x533   :  { %3686 = vmatprep.subr.bf16.mxu1 %v4113_v0 }
 0x534   :  { %3707 = vmatmul.mubr.msk.bf16.vlgmr.msra.gmra.mxu0 %vm127_vm1, %v2126_v20 }
 0x535   :  { %3711 = vmatpush3.bf16.msra.mxu0 %v3902_v21  ;;  %3726 = vmatprep.mubr.msk.bf16.mxu0 %vm4114_vm0, %v4113_v0 }
 0x536   :  { %3687 = vmatpush3.bf16.msra.mxu1 %v3901_v22  ;;  %3712 = vmatprep.subr.bf16.mxu0 %v4113_v0 }
 0x537   :  { %3688 = vmatprep.subr.bf16.mxu1 %v4113_v0 }
 0x539   :  { %3713 = vmatpush3.bf16.msra.mxu0 %v3904_v24 }
 0x53a   :  { %3689 = vmatpush3.bf16.msra.mxu1 %v3903_v25  ;;  %3714 = vmatprep.subr.bf16.mxu0 %v4113_v0 }
 0x53b   :  { %3690 = vmatprep.subr.bf16.mxu1 %v4113_v0 }
 0x53d   :  { %3715 = vmatpush3.bf16.msra.mxu0 %v3906_v27 }
 0x53e   :  { %3691 = vmatpush3.bf16.msra.mxu1 %v3905_v26  ;;  %3716 = vmatprep.subr.bf16.mxu0 %v4113_v0 }
 0x53f   :  { %3692 = vmatprep.subr.bf16.mxu1 %v4113_v0 }
 0x541   :  { %3717 = vmatpush3.bf16.msra.mxu0 %v3908_v28 }
 0x542   :  { %3693 = vmatpush3.bf16.msra.mxu1 %v3907_v1  ;;  %3718 = vmatprep.subr.bf16.mxu0 %v4113_v0 }
 0x543   :  { %3694 = vmatprep.subr.bf16.mxu1 %v4113_v0 }
 0x545   :  { %3719 = vmatpush3.bf16.msra.mxu0 %v3910_v2 }
 0x546   :  { %3695 = vmatpush3.bf16.msra.mxu1 %v3909_v29  ;;  %3720 = vmatprep.subr.bf16.mxu0 %v4113_v0 }
 0x547   :  { %3696 = vmatprep.subr.bf16.mxu1 %v4113_v0 }
 0x549   :  { %3721 = vmatpush3.bf16.msra.mxu0 %v3912_v31 }
 0x54a   :  { %3697 = vmatpush3.bf16.msra.mxu1 %v3911_v30  ;;  %3722 = vmatprep.subr.bf16.mxu0 %v4113_v0  ;;  %v3931_v30 = vld [vmem:[#allocation8 + $0x70] ss:$8 sps:$4 sm:$0xff]  }
 0x54b   :  { %3730 = vmatprep.subr.bf16.mxu1 %v4113_v0 }
 0x54d   :  { %3723 = vmatpush3.bf16.msra.mxu0 %v3913_v32  ;;  %v3936_v32 = vld [vmem:[#allocation8 + $0x64] ss:$8 sps:$4 sm:$0xff]  }
 0x54e   :  { %3724 = vmatprep.subr.bf16.mxu0 %v4113_v0 }
 0x551   :  { %3725 = vmatpush3.bf16.msra.mxu0 %v3914_v33 }
 0x552   :  { %3758 = vmatprep.subr.bf16.mxu0 %v4113_v0 }
 0x5e4   :  { %v1809_v34 = vpop.f32.mrf.mxu1 }
 0x5e5   :  { %v1815_v35 = vadd.f32 %v1809_v34, %v4432_v59 }
 0x5e6   :  { %v3644_v36 = vpop.f32.mrf.mxu1 }
 0x5e7   :  { %v3934_v36 = vld [vmem:[#allocation8 + $0x60] ss:$8 sps:$4 sm:$0xff]  }
 0x5e8   :  { %v1812_v37 = vpop.f32.mrf.mxu1 }
 0x5ea   :  { %v3645_v38 = vpop.f32.mrf.mxu1 }
 0x5eb   :  { %v3939_v38 = vld [vmem:[#allocation8 + $0x54] ss:$8 sps:$4 sm:$0xff]  }
 0x5ec   :  { %v1963_v39 = vpop.f32.mrf.mxu0  ;;  %v2010_v40 = vpop.f32.mrf.mxu1 }
 0x5ed   :  { %v4471_v41 = vadd.f32 %v1963_v39, %v1815_v35  ;;  %v2011_v43 = vadd.f32 %v4476_v42, %v2010_v40 }
 0x5ee   :  { %v3672_v44 = vpop.f32.mrf.mxu0  ;;  %v3680_v45 = vpop.f32.mrf.mxu1 }
 0x5ef   :  { %v2016_v46 = vmax.f32 %v2011_v43, 0.0  ;;  %v3937_v43 = vld [vmem:[#allocation8 + $0x50] ss:$8 sps:$4 sm:$0xff]   ;;  %v3942_v45 = vld [vmem:[#allocation8 + $0x44] ss:$8 sps:$4 sm:$0xff]  }
 0x5f0   :  { %v1966_v47 = vpop.f32.mrf.mxu0  ;;  %v2013_v48 = vpop.f32.mrf.mxu1 }
 0x5f1   :  { %v2017_v49 = vpack.c.bf16 %v2016_v46, %v2016_v46  ;;  %v3940_v47 = vld [vmem:[#allocation8 + $0x40] ss:$8 sps:$4 sm:$0xff]   ;;  %v3945_v48 = vld [vmem:[#allocation8 + $0x34] ss:$8 sps:$4 sm:$0xff]  }
 0x5f2   :  { %v3673_v50 = vpop.f32.mrf.mxu0  ;;  %v3681_v51 = vpop.f32.mrf.mxu1 }
 0x5f3   :  { %3699 = vmatmul.mubr.bf16.vlgmr.msra.gmra.mxu1 %v2017_v49  ;;  %v3943_v49 = vld [vmem:[#allocation8 + $0x30] ss:$8 sps:$4 sm:$0xff]   ;;  %v3946_v50 = vld [vmem:[#allocation8 + $0x20] ss:$8 sps:$4 sm:$0xff]   ;;  %v3951_v51 = vld [vmem:[#allocation8 + $0x14] ss:$8 sps:$4 sm:$0xff]  }
 0x5f4   :  { %v2164_v52 = vpop.f32.mrf.mxu0  ;;  %3731 = vmatpush3.bf16.msra.mxu1 %v4314_v57  ;;  %3734 = vmatprep.mubr.msk.bf16.mxu1 %vm4114_vm0, %v4113_v0 }
 0x5f5   :  { %v2165_v54 = vadd.f32 %v4476_v42, %v2164_v52  ;;  %3732 = vmatprep.subr.bf16.mxu1 %v4113_v0  ;;  %v3949_v52 = vld [vmem:[#allocation8 + $0x10] ss:$8 sps:$4 sm:$0xff]  }
 0x5f6   :  { %v3708_v55 = vpop.f32.mrf.mxu0 }
 0x5f7   :  { %v2170_v56 = vmax.f32 %v2165_v54, 0.0  ;;  %v3952_v54 = vld [vmem:[#allocation8] ss:$8 sps:$4 sm:$0xff]   ;;  %v4115_v55 = vmov 0  }
 0x5f8   :  { %v2167_v59 = vpop.f32.mrf.mxu0  ;;  %3733 = vmatpush3.bf16.msra.mxu1 %v4321_v3 }
 0x5f9   :  { %v2171_v60 = vpack.c.bf16 %v2170_v56, %v2170_v56  ;;  %3738 = vmatprep.subr.bf16.mxu1 %v4113_v0  ;;  %v3955_v56 = vld [vmem:[#allocation10 + $0x78] sm:$0xff]   ;;  %v3957_v59 = vld [vmem:[#allocation10 + $0x70] sm:$0xff]  }
 0x5fa   :  { %v3709_v62 = vpop.f32.mrf.mxu0 }
 0x5fb   :  { %3727 = vmatmul.mubr.bf16.vlgmr.msra.gmra.mxu0 %v2171_v60  ;;  %3735 = vmatmul.mubr.msk.bf16.vlgmr.msra.gmra.mxu1 %vm127_vm1, %v2280_v58  ;;  %v3956_v58 = vld [vmem:[#allocation10 + $0x38] sm:$0xff]   ;;  %v3958_v60 = vld [vmem:[#allocation10 + $0x30] sm:$0xff]   ;;  %v3960_v62 = vld [vmem:[#allocation10 + $0x28] sm:$0xff]  }
 0x5fc   :  { %3759 = vmatpush3.bf16.msra.mxu0 %v4314_v57  ;;  %3762 = vmatprep.mubr.msk.bf16.mxu0 %vm4114_vm0, %v4113_v0  ;;  %v3917_v57 = vld [vmem:[#allocation7 + $0x3a8] sm:$0xff]  }
 0x5fd   :  { %3760 = vmatprep.subr.bf16.mxu0 %v4113_v0  ;;  %3739 = vmatpush3.bf16.msra.mxu1 %v3915_v61  ;;  %v3959_v61 = vld [vmem:[#allocation10 + $0x68] sm:$0xff]  }
 0x5fe   :  { %3740 = vmatprep.subr.bf16.mxu1 %v4113_v0  ;;  %3754 = vmatprep.mubr.msk.bf16.mxu1 %vm4114_vm0, %v4113_v0 }
 0x600   :  { %3761 = vmatpush3.bf16.msra.mxu0 %v4321_v3  ;;  %v3921_v3 = vld [vmem:[#allocation7 + $0x398] sm:$0xff]  }
 0x601   :  { %3741 = vmatpush3.bf16.msra.mxu1 %v3916_v4  ;;  %3766 = vmatprep.subr.bf16.mxu0 %v4113_v0  ;;  %v3962_v4 = vld [vmem:[#allocation10 + $0x20] sm:$0xff]  }
 0x602   :  { %3742 = vmatprep.subr.bf16.mxu1 %v4113_v0 }
 0x603   :  { %3763 = vmatmul.mubr.msk.bf16.vlgmr.msra.gmra.mxu0 %vm127_vm1, %v2434_v5  ;;  %v3963_v5 = vld [vmem:[#allocation10 + $0x58] sm:$0xff]  }
 0x604   :  { %3767 = vmatpush3.bf16.msra.mxu0 %v3918_v6  ;;  %3782 = vmatprep.mubr.msk.bf16.mxu0 %vm4114_vm0, %v4113_v0  ;;  %v3964_v6 = vld [vmem:[#allocation10 + $0x18] sm:$0xff]  }
 0x605   :  { %3743 = vmatpush3.bf16.msra.mxu1 %v3917_v57  ;;  %3768 = vmatprep.subr.bf16.mxu0 %v4113_v0  ;;  %v3965_v57 = vld [vmem:[#allocation10 + $0x50] sm:$0xff]  }
 0x606   :  { %3744 = vmatprep.subr.bf16.mxu1 %v4113_v0 }
 0x608   :  { %3769 = vmatpush3.bf16.msra.mxu0 %v3920_v7  ;;  %v3966_v7 = vld [vmem:[#allocation10 + $0x10] sm:$0xff]  }
 0x609   :  { %3745 = vmatpush3.bf16.msra.mxu1 %v3919_v8  ;;  %3770 = vmatprep.subr.bf16.mxu0 %v4113_v0 }
 0x60a   :  { %3746 = vmatprep.subr.bf16.mxu1 %v4113_v0 }
 0x60c   :  { %3771 = vmatpush3.bf16.msra.mxu0 %v3922_v9 }
 0x60d   :  { %3747 = vmatpush3.bf16.msra.mxu1 %v3921_v3  ;;  %3772 = vmatprep.subr.bf16.mxu0 %v4113_v0 }
 0x60e   :  { %3748 = vmatprep.subr.bf16.mxu1 %v4113_v0 }
 0x610   :  { %3773 = vmatpush3.bf16.msra.mxu0 %v3924_v11 }
 0x611   :  { %3749 = vmatpush3.bf16.msra.mxu1 %v3923_v10  ;;  %3774 = vmatprep.subr.bf16.mxu0 %v4113_v0 }
 0x612   :  { %3750 = vmatprep.subr.bf16.mxu1 %v4113_v0 }
 0x614   :  { %3775 = vmatpush3.bf16.msra.mxu0 %v3926_v13  ;;  %v3090_v13 = vld [vmem:[%s4534_s4] ss:$0 sm:$0xff] }
 0x615   :  { %3751 = vmatpush3.bf16.msra.mxu1 %v3925_v12  ;;  %3776 = vmatprep.subr.bf16.mxu0 %v4113_v0 }
 0x616   :  { %3752 = vmatprep.subr.bf16.mxu1 %v4113_v0 }
 0x618   :  { %3777 = vmatpush3.bf16.msra.mxu0 %v3928_v15 }
 0x619   :  { %3753 = vmatpush3.bf16.msra.mxu1 %v3927_v14  ;;  %3778 = vmatprep.subr.bf16.mxu0 %v4113_v0 }
 0x61a   :  { %2704 = vmatprep.subr.bf16.mxu1 %v3933_v18 }
 0x61c   :  { %3779 = vmatpush3.bf16.msra.mxu0 %v3929_v16 }
 0x61d   :  { %3780 = vmatprep.subr.bf16.mxu0 %v4113_v0 }
 0x620   :  { %3781 = vmatpush3.bf16.msra.mxu0 %v3930_v17 }
 0x621   :  { %3316 = vmatprep.subr.bf16.mxu0 %v3955_v56 }
 0x6b3   :  { %v2117_v23 = vpop.f32.mrf.mxu1 }
 0x6b4   :  { %v2123_v19 = vadd.f32 %v2117_v23, %v4471_v41 }
 0x6b5   :  { %v3700_v20 = vpop.f32.mrf.mxu1 }
 0x6b6   :  { %v3967_v20 = vld [vmem:[#allocation10 + $0x48] sm:$0xff]  }
 0x6b7   :  { %v2120_v21 = vpop.f32.mrf.mxu1 }
 0x6b8   :  { %v3968_v21 = vld [vmem:[#allocation10 + $0x8] sm:$0xff]  }
 0x6b9   :  { %v3701_v22 = vpop.f32.mrf.mxu1 }
 0x6ba   :  { %v3969_v22 = vld [vmem:[#allocation10 + $0x40] sm:$0xff]  }
 0x6bb   :  { %v2271_v24 = vpop.f32.mrf.mxu0  ;;  %v2318_v25 = vpop.f32.mrf.mxu1 }
 0x6bc   :  { %v4513_v26 = vadd.f32 %v2271_v24, %v2123_v19  ;;  %v2319_v27 = vadd.f32 %v4476_v42, %v2318_v25  ;;  %v3970_v24 = vld [vmem:[#allocation10] sm:$0xff]   ;;  %v2614_v25 = vlaneseq }
 0x6bd   :  { %v3728_v1 = vpop.f32.mrf.mxu0  ;;  %v3736_v28 = vpop.f32.mrf.mxu1 }
 0x6be   :  { %v2324_v29 = vmax.f32 %v2319_v27, 0.0  ;;  %v2612_v1 = vld [vmem:[%s4536_s6] sm:$0x3]  ;;  %s4116_s6 = smov [#allocation11]  }
 0x6bf   :  { %v2274_v0 = vpop.f32.mrf.mxu0  ;;  %v2321_v2 = vpop.f32.mrf.mxu1  ;;  %s2932_s22 = sshll.u32 %s4116_s6, 4  ;;  %s2933_s22 = int_to_ptr.vmem [resolvable:$true] %s2932_s22 }
 0x6c0   :  { %v2325_v31 = vpack.c.bf16 %v2324_v29, %v2324_v29  ;;  %s4074_s23 = scalar_lea.vmem %s2933_s22, 32  ;;  %p4079_p12 = scmp.lt.s32.totalorder %s2933_s22, %s2933_s22 }
 0x6c1   :  { %v3729_v33 = vpop.f32.mrf.mxu0  ;;  %v3737_v34 = vpop.f32.mrf.mxu1  ;;  %p4075_p11 = scmp.ne.s32.totalorder %s2933_s22, %s4074_s23  ;;  %p4080_p13 = scmp.lt.s32.totalorder %s4074_s23, %s4074_s23 }
 0x6c2   :  { %3755 = vmatmul.mubr.bf16.vlgmr.msra.gmra.mxu1 %v2325_v31 }
 0x6c3   :  { %v2472_v35 = vpop.f32.mrf.mxu0  ;;  %2705 = vmatpush1.bf16.msra.mxu1 %v3931_v30  ;;  %2736 = vmatprep.mubr.bf16.mxu1 %v4115_v55  ;;  %p4081_p0 = por %p4080_p13, %p4079_p12 }
 0x6c4   :  { %v2473_v37 = vadd.f32 %v4476_v42, %v2472_v35  ;;  %2706 = vmatprep.subr.bf16.mxu1 %v3936_v32  ;;  %v3948_v42 = vld [vmem:[#allocation8 + $0x24] ss:$8 sps:$4 sm:$0xff]  }
 0x6c5   :  { %v3764_v39 = vpop.f32.mrf.mxu0  ;;  %p4082_p1 = pnand %p4081_p0, %p4075_p11 }
 0x6c6   :  { %v2478_v40 = vmax.f32 %v2473_v37, 0.0 }
 0x6c7   :  { %v2475_v41 = vpop.f32.mrf.mxu0  ;;  %2707 = vmatpush1.bf16.msra.mxu1 %v3934_v36 }
 0x6c8   :  { %v2479_v44 = vpack.c.bf16 %v2478_v40, %v2478_v40  ;;  %2708 = vmatprep.subr.bf16.mxu1 %v3939_v38  ;;  %v3107_v40 = vld [vmem:[%s4538_s8] ss:$0 sm:$0xff] }
 0x6c9   :  { %v3765_v46 = vpop.f32.mrf.mxu0 }
 0x6ca   :  { %3783 = vmatmul.mubr.bf16.vlgmr.msra.gmra.mxu0 %v2479_v44 }
 0x6cb   :  { %2709 = vmatpush1.bf16.msra.mxu1 %v3937_v43  ;;  %3317 = vmatpush3.bf16.msra.mxu0 %v3956_v58 }
 0x6cc   :  { %2710 = vmatprep.subr.bf16.mxu1 %v3942_v45  ;;  %3318 = vmatprep.subr.bf16.mxu0 %v3957_v59 }
 0x6cf   :  { %2711 = vmatpush1.bf16.msra.mxu1 %v3940_v47  ;;  %3319 = vmatpush3.bf16.msra.mxu0 %v3958_v60 }
 0x6d0   :  { %2712 = vmatprep.subr.bf16.mxu1 %v3945_v48  ;;  %3320 = vmatprep.subr.bf16.mxu0 %v3959_v61 }
 0x6d3   :  { %2713 = vmatpush1.bf16.msra.mxu1 %v3943_v49  ;;  %3321 = vmatpush3.bf16.msra.mxu0 %v3960_v62 }
 0x6d4   :  { %2714 = vmatprep.subr.bf16.mxu1 %v3948_v42  ;;  %3322 = vmatprep.subr.bf16.mxu0 %v3961_v63 }
 0x6d7   :  { %2715 = vmatpush1.bf16.msra.mxu1 %v3946_v50  ;;  %3323 = vmatpush3.bf16.msra.mxu0 %v3962_v4 }
 0x6d8   :  { %2716 = vmatprep.subr.bf16.mxu1 %v3951_v51  ;;  %3324 = vmatprep.subr.bf16.mxu0 %v3963_v5 }
 0x6db   :  { %2717 = vmatpush1.bf16.msra.mxu1 %v3949_v52  ;;  %3325 = vmatpush3.bf16.msra.mxu0 %v3964_v6 }
 0x6dc   :  { %2718 = vmatprep.subr.bf16.mxu1 %v3954_v53  ;;  %3326 = vmatprep.subr.bf16.mxu0 %v3965_v57 }
 0x6df   :  { %2719 = vmatpush1.bf16.msra.mxu1 %v3952_v54  ;;  %3327 = vmatpush3.bf16.msra.mxu0 %v3966_v7 }
 0x6e0   :  { %3328 = vmatprep.subr.bf16.mxu0 %v3967_v20 }
 0x6e3   :  { %3329 = vmatpush3.bf16.msra.mxu0 %v3968_v21 }
 0x6e4   :  { %3330 = vmatprep.subr.bf16.mxu0 %v3969_v22 }
 0x6e7   :  { %3331 = vmatpush3.bf16.msra.mxu0 %v3970_v24 }
 0x782   :  { %v2425_v8 = vpop.f32.mrf.mxu1 }
 0x783   :  { %v2431_v11 = vadd.f32 %v2425_v8, %v4513_v26  ;;  %v2615_v26 = vshrl.u32 %v2614_v25, 7 }
 0x784   :  { %v3756_v3 = vpop.f32.mrf.mxu1 }
 0x785   :  { %v2616_v27 = vsub.s32 0, %v2615_v26  ;;  %v2620_v28 = vsub.s32 1, %v2615_v26 }
 0x786   :  { %v2428_v9 = vpop.f32.mrf.mxu1 }
 0x787   :  { %v2617_v29 = vrot.slane %v2612_v1, %v2616_v27  ;;  %v2621_v0 = vrot.slane %v2612_v1, %v2620_v28 }
 0x788   :  { %v3757_v10 = vpop.f32.mrf.mxu1 }
 0x78a   :  { %v2579_v12 = vpop.f32.mrf.mxu0 }
 0x78b   :  { %v2585_v14 = vadd.f32 %v2579_v12, %v2431_v11 }
 0x78c   :  { %v3784_v15 = vpop.f32.mrf.mxu0 }
 0x78d   :  { %v2593_v16 = vadd.f32 %v3090_v13, %v2585_v14 }
 0x78e   :  { %v2582_v17 = vpop.f32.mrf.mxu0 }
 0x78f   :  { %v2594_v18 = vmax.f32 %v2593_v16, 0.0 }
 0x790   :  { %v3785_v23 = vpop.f32.mrf.mxu0 }
 0x791   :  { %v2595_v19 = vpack.c.bf16 %v2594_v18, %v2594_v18 }
 0x793   :  { %2737 = vmatmul.mubr.bf16.vlgmr.msra.gmra.mxu1 %v2595_v19 }
 0x853   :  { %v2738_v2 = vpop.f32.mrf.mxu1 }
 0x854   :  { %v2739_v30 = vadd.f32 %v2738_v2, %v2617_v29 }
 0x855   :  { %v2740_v31 = vpop.f32.mrf.mxu1 }
 0x856   :  { %v2741_v32 = vadd.f32 %v2740_v31, %v2621_v0  ;;  %v2745_v33 = vmax.f32 %v2739_v30, 0.0 }
 0x857   :  { %v2742_v34 = vpop.f32.mrf.mxu1 }
 0x858   :  { %v2746_v35 = vmax.f32 %v2741_v32, 0.0  ;;  %v2747_v38 = vpack.c.bf16 %v2745_v33, %v2745_v33 }
 0x859   :  { %v2743_v36 = vpop.f32.mrf.mxu1 }
 0x85a   :  { %v2748_v37 = vpack.c.bf16 %v2746_v35, %v2746_v35 }
 0x85c   :  { %2916 = vmatprep.mubr.bf16.mxu0 %v2748_v37 }
 0x85d   :  { %2917 = vmatmul.mubr.bf16.vlgmr.msra.gmra.mxu0 %v2747_v38 }
 0x91d   :  { %v3332_v39 = vpop.f32.mrf.mxu0 }
 0x91f   :  { %v3333_v41 = vpop.f32.mrf.mxu0 }
 0x920   :  { %v3334_v43 = vadd.f32 %v3333_v41, %v3332_v39 }
 0x921   :  { %v3335_v44 = vpop.f32.mrf.mxu0 }
 0x922   :  { %v2919_v45 = vadd.f32 %v3334_v43, %v3107_v40 }
 0x923   :  { %v3336_v46 = vpop.f32.mrf.mxu0 }
 0x924   :  { %v2924_v47 = vmax.f32 %v2919_v45, 0.0 }
 0x926   :  { %2925 = vst [vmem:[#allocation11] sm:$0x3] %v2924_v47 }
 0x927   :  { %4085 = shalt.err (!%p4082_p1)
}
 0x928   :  { %2935 = dma.vmem_to_hbm [thread:$0]  %s2933_s22, 32, %s4539_s9, [#allocation4]  }
 0x929   :  { %4100 = dma.done.wait [#allocation4], 32  }
 0x92a   :  { %4101 = vsyncadd [#allocation4], 4294967264 }
 0x92b   :  { %2939 = vsyncpa [#allocation3], 1 }
 0x92c   :  { %2940 = vsyncpa [#allocation6], 1 }
 0x92d   :  { %2941 = vsyncpa [#allocation9], 1 }
 0x92e   :  { %2942 = vsyncpa [#allocation4], 1 }

</bundles_post_ra>
